<compile_context>
chip_gen: v7x
topology: tpu7x:2x2x1
jax: 0.10.0
libtpu: 0.0.40
codegen_flags: <defaults>
</compile_context>

<pallas_src>
import functools
import math

import jax
import jax.numpy as jnp
from jax.experimental import pallas as pl
from jax.experimental.pallas import tpu as pltpu


def _round_up(x: int, m: int) -> int:
    return (x + m - 1) // m * m


def _pad_in_proj_weight(w, H, d_k, Dp, dkp):
    """w: (D, H*d_k) already (in, out). Returns (Dp, H*dkp) with each head's
    d_k output columns placed at a 128-aligned block, padded columns zero."""
    D = w.shape[0]
    w = w.reshape(D, H, d_k)
    w = jnp.pad(w, ((0, Dp - D), (0, 0), (0, dkp - d_k)))
    return w.reshape(Dp, H * dkp)


def _pad_out_proj_weight(w, H, d_k, Dp, dkp):
    """w: (H*d_k, D) already (in, out) for W_O. Returns (H*dkp, Dp) with zero
    rows at padded per-head positions and zero columns past D."""
    D = w.shape[1]
    w = w.reshape(H, d_k, D)
    w = jnp.pad(w, ((0, 0), (0, dkp - d_k), (0, Dp - D)))
    return w.reshape(H * dkp, Dp)


def _mha_kernel(*refs, H: int, dkp: int, scale: float, has_mask: bool):
    """One batch element per grid step. Everything runs on-chip:
    lane-dense QKV projections, per-head attention on 128-aligned head slices
    (deferred-normalization softmax), one lane-dense output projection."""
    if has_mask:
        (q_ref, k_ref, v_ref, mask_ref,
         wq_ref, wk_ref, wv_ref, wo_ref, o_ref, ctx_ref) = refs
    else:
        (q_ref, k_ref, v_ref,
         wq_ref, wk_ref, wv_ref, wo_ref, o_ref, ctx_ref) = refs

    xq = q_ref[0]            # (S, Dp)
    xk = k_ref[0]            # (S, Dp)
    xv = v_ref[0]            # (S, Dp)

    # Hoisted, lane-dense projections (one MXU pass each). Scale folded into Q
    # once: one (S, H*dkp) VPU multiply instead of H x (S, S) multiplies.
    q = jnp.dot(xq, wq_ref[...], preferred_element_type=jnp.float32) * scale
    k = jnp.dot(xk, wk_ref[...], preferred_element_type=jnp.float32)
    v = jnp.dot(xv, wv_ref[...], preferred_element_type=jnp.float32)

    if has_mask:
        # Hoisted out of the head loop; finite bias avoids NaN on fully-masked rows.
        bias = jnp.where(mask_ref[0, 0].astype(jnp.int32) == 0,
                         jnp.float32(-1e30), jnp.float32(0.0))       # (S, S)

    for h in range(H):  # static Python loop over heads; slices are 128-aligned
        lo = h * dkp
        qh = q[:, lo:lo + dkp]                                        # (S, dkp)
        kh = k[:, lo:lo + dkp]                                        # (S, dkp)
        vh = v[:, lo:lo + dkp]                                        # (S, dkp)

        # Q_h @ K_h^T without materializing a transpose.
        s = jax.lax.dot_general(qh, kh, (((1,), (1,)), ((), ())),
                                preferred_element_type=jnp.float32)   # (S, S)
        if has_mask:
            s = s + bias

        # Numerically stable softmax with deferred normalization.
        m = jnp.max(s, axis=-1, keepdims=True)
        p = jnp.exp(s - m)
        r = jnp.sum(p, axis=-1, keepdims=True)

        ctx_h = jnp.dot(p, vh, preferred_element_type=jnp.float32)    # (S, dkp)
        ctx_ref[:, lo:lo + dkp] = ctx_h * pl.reciprocal(r, approx=False)

    # Single lane-dense output projection (contraction depth H*dkp).
    o_ref[0] = jnp.dot(ctx_ref[...], wo_ref[...],
                       preferred_element_type=jnp.float32).astype(o_ref.dtype)


def multi_headed_attention(query, key, value, wq, wk, wv, wo, H, mask=None):
    """query/key/value: (B, S, D); wq/wk/wv/wo: (D, D) already transposed to
    (in, out); mask: optional (B, 1, S, S) bool/int (1 = keep). Returns (B, S, D)."""
    B, S, D = query.shape
    assert D % H == 0, "d_model must be divisible by H"
    d_k = D // H
    assert S % 8 == 0, "sequence length must be a multiple of 8 (TPU sublane)"

    # Pad model dim and per-head dim to 128 so all matmul operands are
    # (8, 128)-tile aligned and the MXU runs lane-dense. Zero padding is inert.
    Dp = _round_up(D, 128)
    dkp = _round_up(d_k, 128)
    Hdkp = H * dkp

    pad_seq = lambda x: jnp.pad(x, ((0, 0), (0, 0), (0, Dp - D)))
    qp, kp, vp = pad_seq(query), pad_seq(key), pad_seq(value)

    wq_p = _pad_in_proj_weight(wq, H, d_k, Dp, dkp)
    wk_p = _pad_in_proj_weight(wk, H, d_k, Dp, dkp)
    wv_p = _pad_in_proj_weight(wv, H, d_k, Dp, dkp)
    wo_p = _pad_out_proj_weight(wo, H, d_k, Dp, dkp)

    has_mask = mask is not None

    seq_spec = pl.BlockSpec((1, S, Dp), lambda b: (b, 0, 0))
    win_spec = pl.BlockSpec((Dp, Hdkp), lambda b: (0, 0))
    wout_spec = pl.BlockSpec((Hdkp, Dp), lambda b: (0, 0))

    operands = [qp, kp, vp]
    in_specs = [seq_spec, seq_spec, seq_spec]
    if has_mask:
        operands.append(mask.astype(jnp.int8))       # 4x smaller DMA than int32
        in_specs.append(pl.BlockSpec((1, 1, S, S), lambda b: (b, 0, 0, 0)))
    operands += [wq_p, wk_p, wv_p, wo_p]
    in_specs += [win_spec, win_spec, win_spec, wout_spec]

    kernel = functools.partial(
        _mha_kernel, H=H, dkp=dkp, scale=1.0 / math.sqrt(float(d_k)),
        has_mask=has_mask)

    # Advisory cost estimate so XLA schedules well around the custom call.
    flops = (2 * B * S * Dp * Hdkp * 3          # Q/K/V projections
             + 2 * B * H * S * S * dkp * 2      # scores + PV
             + 2 * B * S * Hdkp * Dp)           # output projection
    bytes_accessed = (4 * 3 * B * S * Dp                 # q/k/v in
                      + 4 * (3 * Dp * Hdkp + Hdkp * Dp)  # weights
                      + (B * S * S if has_mask else 0)   # int8 mask
                      + 4 * B * S * Dp)                  # out
    cost = pl.CostEstimate(flops=flops, transcendentals=B * H * S * S,
                           bytes_accessed=bytes_accessed)

    out_padded = pl.pallas_call(
        kernel,
        out_shape=jax.ShapeDtypeStruct((B, S, Dp), query.dtype),
        grid_spec=pltpu.PrefetchScalarGridSpec(
            num_scalar_prefetch=0,
            grid=(B,),
            in_specs=in_specs,
            out_specs=pl.BlockSpec((1, S, Dp), lambda b: (b, 0, 0)),
            scratch_shapes=[pltpu.VMEM((S, Hdkp), jnp.float32)],  # per-head context
        ),
        compiler_params=pltpu.CompilerParams(
            dimension_semantics=("parallel",),        # shard batch across cores
            vmem_limit_bytes=48 * 1024 * 1024,        # fits v7x 64 MiB with headroom
        ),
        cost_estimate=cost,
    )(*operands)

    return out_padded[:, :, :D]


def _xavier_uniform(key, out_features, in_features):
    """Deterministic xavier_uniform_ like torch (gain=1)."""
    bound = math.sqrt(6.0 / (in_features + out_features))
    return jax.random.uniform(key, (out_features, in_features),
                              dtype=jnp.float32, minval=-bound, maxval=bound)


def _reference_mha(q, k, v, wq, wk, wv, wo, H, mask=None):
    """Plain-JAX reference mirroring the PyTorch module exactly."""
    B, S, D = q.shape
    d_k = D // H

    def proj(x, w):  # w is (D_in, D_out)
        return (x @ w).reshape(B, S, H, d_k).transpose(0, 2, 1, 3)  # (B, H, S, d_k)

    Q, K, V = proj(q, wq), proj(k, wk), proj(v, wv)
    scores = jnp.einsum('bhqd,bhkd->bhqk', Q, K) / jnp.sqrt(jnp.float32(d_k))
    if mask is not None:
        scores = jnp.where(mask == 0, -jnp.inf, scores)
    w = jax.nn.softmax(scores, axis=-1)
    ctx = jnp.einsum('bhqk,bhkd->bhqd', w, V)                      # (B, H, S, d_k)
    ctx = ctx.transpose(0, 2, 1, 3).reshape(B, S, D)
    return ctx @ wo


if __name__ == "__main__":
    B, S, D, H = 2, 8, 32, 4

    root = jax.random.PRNGKey(0)
    kq, kk, kv, kwq, kwk, kwv, kwo = jax.random.split(root, 7)

    query = jax.random.normal(kq, (B, S, D), dtype=jnp.float32)
    key = jax.random.normal(kk, (B, S, D), dtype=jnp.float32)
    value = jax.random.normal(kv, (B, S, D), dtype=jnp.float32)

    # nn.Linear weights (out, in) with xavier_uniform init, then transpose to (in, out)
    W_Q = _xavier_uniform(kwq, D, D).T
    W_K = _xavier_uniform(kwk, D, D).T
    W_V = _xavier_uniform(kwv, D, D).T
    W_O = _xavier_uniform(kwo, D, D).T

    # --- no-mask case ---
    out = multi_headed_attention(query, key, value, W_Q, W_K, W_V, W_O, H, mask=None)
    out = jax.block_until_ready(out)
    ref = _reference_mha(query, key, value, W_Q, W_K, W_V, W_O, H, mask=None)
    assert out.shape == (B, S, D)
    assert jnp.allclose(out, ref, atol=1e-4, rtol=1e-4), "mismatch vs reference (no mask)"

    # --- causal-mask case (every row keeps >= 1 key, matching torch -inf fill) ---
    causal = jnp.tril(jnp.ones((S, S), dtype=jnp.int32))
    mask = jnp.broadcast_to(causal, (B, 1, S, S))
    out_m = multi_headed_attention(query, key, value, W_Q, W_K, W_V, W_O, H, mask=mask)
    out_m = jax.block_until_ready(out_m)
    ref_m = _reference_mha(query, key, value, W_Q, W_K, W_V, W_O, H, mask=mask)
    assert jnp.allclose(out_m, ref_m, atol=1e-4, rtol=1e-4), "mismatch vs reference (mask)"

    print("KERNEL_OK")
</pallas_src>

<mosaic_0001>
module attributes {stable_mosaic.version = 11 : i64} {
  func.func @_mha_kernel(%arg0: i32, %arg1: memref<1x8x128xf32, #tpu.memory_space<vmem>>, %arg2: memref<1x8x128xf32, #tpu.memory_space<vmem>>, %arg3: memref<1x8x128xf32, #tpu.memory_space<vmem>>, %arg4: memref<128x512xf32, #tpu.memory_space<vmem>>, %arg5: memref<128x512xf32, #tpu.memory_space<vmem>>, %arg6: memref<128x512xf32, #tpu.memory_space<vmem>>, %arg7: memref<512x128xf32, #tpu.memory_space<vmem>>, %arg8: memref<1x8x128xf32, #tpu.memory_space<vmem>>, %arg9: memref<8x512xf32, #tpu.memory_space<vmem>>) attributes {dimension_semantics = [#tpu.dimension_semantics<parallel>], iteration_bounds = array<i64: 2>, scalar_prefetch = 0 : i64, scratch_operands = 1 : i64, tpu.core_type = #tpu.core_type<tc>, window_params = [{transform_indices = @transform_0, window_bounds = array<i64: 1, 8, 128>}, {transform_indices = @transform_1, window_bounds = array<i64: 1, 8, 128>}, {transform_indices = @transform_2, window_bounds = array<i64: 1, 8, 128>}, {pipeline_mode = #tpu.pipeline_mode<synchronous>, transform_indices = @transform_3, window_bounds = array<i64: 128, 512>}, {pipeline_mode = #tpu.pipeline_mode<synchronous>, transform_indices = @transform_4, window_bounds = array<i64: 128, 512>}, {pipeline_mode = #tpu.pipeline_mode<synchronous>, transform_indices = @transform_5, window_bounds = array<i64: 128, 512>}, {pipeline_mode = #tpu.pipeline_mode<synchronous>, transform_indices = @transform_6, window_bounds = array<i64: 512, 128>}, {transform_indices = @transform_7, window_bounds = array<i64: 1, 8, 128>}]} {
    %c0 = arith.constant 0 : index
    %c0_0 = arith.constant 0 : index
    %c0_1 = arith.constant 0 : index
    %0 = vector.load %arg1[%c0, %c0_0, %c0_1] : memref<1x8x128xf32, #tpu.memory_space<vmem>>, vector<1x8x128xf32>
    %1 = vector.shape_cast %0 : vector<1x8x128xf32> to vector<8x128xf32>
    %c0_2 = arith.constant 0 : index
    %c0_3 = arith.constant 0 : index
    %c0_4 = arith.constant 0 : index
    %2 = vector.load %arg2[%c0_2, %c0_3, %c0_4] : memref<1x8x128xf32, #tpu.memory_space<vmem>>, vector<1x8x128xf32>
    %3 = vector.shape_cast %2 : vector<1x8x128xf32> to vector<8x128xf32>
    %c0_5 = arith.constant 0 : index
    %c0_6 = arith.constant 0 : index
    %c0_7 = arith.constant 0 : index
    %4 = vector.load %arg3[%c0_5, %c0_6, %c0_7] : memref<1x8x128xf32, #tpu.memory_space<vmem>>, vector<1x8x128xf32>
    %5 = vector.shape_cast %4 : vector<1x8x128xf32> to vector<8x128xf32>
    %c0_8 = arith.constant 0 : index
    %c0_9 = arith.constant 0 : index
    %6 = vector.load %arg4[%c0_8, %c0_9] : memref<128x512xf32, #tpu.memory_space<vmem>>, vector<128x512xf32>
    %cst = arith.constant dense<0.000000e+00> : vector<8x512xf32>
    %7 = tpu.matmul %1, %6, %cst {dimension_numbers = #tpu.dot_dimension_numbers<[1], [0], [0], [1], [0, 0, 1, 1], [], []>} : vector<8x128xf32>, vector<128x512xf32>, vector<8x512xf32> -> vector<8x512xf32>
    %cst_10 = arith.constant 0.353553385 : f32
    %8 = vector.broadcast %cst_10 : f32 to vector<8x512xf32>
    %9 = arith.mulf %7, %8 : vector<8x512xf32>
    %c0_11 = arith.constant 0 : index
    %c0_12 = arith.constant 0 : index
    %10 = vector.load %arg5[%c0_11, %c0_12] : memref<128x512xf32, #tpu.memory_space<vmem>>, vector<128x512xf32>
    %cst_13 = arith.constant dense<0.000000e+00> : vector<8x512xf32>
    %11 = tpu.matmul %3, %10, %cst_13 {dimension_numbers = #tpu.dot_dimension_numbers<[1], [0], [0], [1], [0, 0, 1, 1], [], []>} : vector<8x128xf32>, vector<128x512xf32>, vector<8x512xf32> -> vector<8x512xf32>
    %c0_14 = arith.constant 0 : index
    %c0_15 = arith.constant 0 : index
    %12 = vector.load %arg6[%c0_14, %c0_15] : memref<128x512xf32, #tpu.memory_space<vmem>>, vector<128x512xf32>
    %cst_16 = arith.constant dense<0.000000e+00> : vector<8x512xf32>
    %13 = tpu.matmul %5, %12, %cst_16 {dimension_numbers = #tpu.dot_dimension_numbers<[1], [0], [0], [1], [0, 0, 1, 1], [], []>} : vector<8x128xf32>, vector<128x512xf32>, vector<8x512xf32> -> vector<8x512xf32>
    %14 = vector.extract_strided_slice %9 {offsets = [0, 0], sizes = [8, 128], strides = [1, 1]} : vector<8x512xf32> to vector<8x128xf32>
    %15 = vector.extract_strided_slice %11 {offsets = [0, 0], sizes = [8, 128], strides = [1, 1]} : vector<8x512xf32> to vector<8x128xf32>
    %16 = vector.extract_strided_slice %13 {offsets = [0, 0], sizes = [8, 128], strides = [1, 1]} : vector<8x512xf32> to vector<8x128xf32>
    %cst_17 = arith.constant dense<0.000000e+00> : vector<8x8xf32>
    %17 = tpu.matmul %14, %15, %cst_17 {dimension_numbers = #tpu.dot_dimension_numbers<[1], [1], [0], [0], [0, 0, 1, 0], [], []>} : vector<8x128xf32>, vector<8x128xf32>, vector<8x8xf32> -> vector<8x8xf32>
    %cst_18 = arith.constant dense<0xFF800000> : vector<8xf32>
    %18 = vector.multi_reduction <maximumf>, %17, %cst_18 [1] : vector<8x8xf32> to vector<8xf32>
    %19 = vector.shape_cast %18 : vector<8xf32> to vector<8x1xf32>
    %20 = vector.broadcast %19 : vector<8x1xf32> to vector<8x8xf32>
    %21 = arith.subf %17, %20 : vector<8x8xf32>
    %22 = math.exp %21 : vector<8x8xf32>
    %cst_19 = arith.constant dense<0.000000e+00> : vector<8xf32>
    %23 = vector.multi_reduction <add>, %22, %cst_19 [1] : vector<8x8xf32> to vector<8xf32>
    %24 = vector.shape_cast %23 : vector<8xf32> to vector<8x1xf32>
    %cst_20 = arith.constant dense<0.000000e+00> : vector<8x128xf32>
    %25 = tpu.matmul %22, %16, %cst_20 {dimension_numbers = #tpu.dot_dimension_numbers<[1], [0], [0], [1], [0, 0, 1, 1], [], []>} : vector<8x8xf32>, vector<8x128xf32>, vector<8x128xf32> -> vector<8x128xf32>
    %26 = tpu.reciprocal %24 : vector<8x1xf32> -> vector<8x1xf32>
    %27 = vector.broadcast %26 : vector<8x1xf32> to vector<8x128xf32>
    %28 = arith.mulf %25, %27 : vector<8x128xf32>
    %c0_21 = arith.constant 0 : index
    %c0_22 = arith.constant 0 : index
    %29 = vector.load %arg9[%c0_21, %c0_22] : memref<8x512xf32, #tpu.memory_space<vmem>>, vector<8x128xf32>
    tpu.vector_store %arg9[%c0_21, %c0_22], %28 {strides = array<i32>} : memref<8x512xf32, #tpu.memory_space<vmem>>, vector<8x128xf32>,
    %30 = vector.extract_strided_slice %9 {offsets = [0, 128], sizes = [8, 128], strides = [1, 1]} : vector<8x512xf32> to vector<8x128xf32>
    %31 = vector.extract_strided_slice %11 {offsets = [0, 128], sizes = [8, 128], strides = [1, 1]} : vector<8x512xf32> to vector<8x128xf32>
    %32 = vector.extract_strided_slice %13 {offsets = [0, 128], sizes = [8, 128], strides = [1, 1]} : vector<8x512xf32> to vector<8x128xf32>
    %cst_23 = arith.constant dense<0.000000e+00> : vector<8x8xf32>
    %33 = tpu.matmul %30, %31, %cst_23 {dimension_numbers = #tpu.dot_dimension_numbers<[1], [1], [0], [0], [0, 0, 1, 0], [], []>} : vector<8x128xf32>, vector<8x128xf32>, vector<8x8xf32> -> vector<8x8xf32>
    %cst_24 = arith.constant dense<0xFF800000> : vector<8xf32>
    %34 = vector.multi_reduction <maximumf>, %33, %cst_24 [1] : vector<8x8xf32> to vector<8xf32>
    %35 = vector.shape_cast %34 : vector<8xf32> to vector<8x1xf32>
    %36 = vector.broadcast %35 : vector<8x1xf32> to vector<8x8xf32>
    %37 = arith.subf %33, %36 : vector<8x8xf32>
    %38 = math.exp %37 : vector<8x8xf32>
    %cst_25 = arith.constant dense<0.000000e+00> : vector<8xf32>
    %39 = vector.multi_reduction <add>, %38, %cst_25 [1] : vector<8x8xf32> to vector<8xf32>
    %40 = vector.shape_cast %39 : vector<8xf32> to vector<8x1xf32>
    %cst_26 = arith.constant dense<0.000000e+00> : vector<8x128xf32>
    %41 = tpu.matmul %38, %32, %cst_26 {dimension_numbers = #tpu.dot_dimension_numbers<[1], [0], [0], [1], [0, 0, 1, 1], [], []>} : vector<8x8xf32>, vector<8x128xf32>, vector<8x128xf32> -> vector<8x128xf32>
    %42 = tpu.reciprocal %40 : vector<8x1xf32> -> vector<8x1xf32>
    %43 = vector.broadcast %42 : vector<8x1xf32> to vector<8x128xf32>
    %44 = arith.mulf %41, %43 : vector<8x128xf32>
    %c0_27 = arith.constant 0 : index
    %c128 = arith.constant 128 : index
    %45 = vector.load %arg9[%c0_27, %c128] : memref<8x512xf32, #tpu.memory_space<vmem>>, vector<8x128xf32>
    tpu.vector_store %arg9[%c0_27, %c128], %44 {strides = array<i32>} : memref<8x512xf32, #tpu.memory_space<vmem>>, vector<8x128xf32>,
    %46 = vector.extract_strided_slice %9 {offsets = [0, 256], sizes = [8, 128], strides = [1, 1]} : vector<8x512xf32> to vector<8x128xf32>
    %47 = vector.extract_strided_slice %11 {offsets = [0, 256], sizes = [8, 128], strides = [1, 1]} : vector<8x512xf32> to vector<8x128xf32>
    %48 = vector.extract_strided_slice %13 {offsets = [0, 256], sizes = [8, 128], strides = [1, 1]} : vector<8x512xf32> to vector<8x128xf32>
    %cst_28 = arith.constant dense<0.000000e+00> : vector<8x8xf32>
    %49 = tpu.matmul %46, %47, %cst_28 {dimension_numbers = #tpu.dot_dimension_numbers<[1], [1], [0], [0], [0, 0, 1, 0], [], []>} : vector<8x128xf32>, vector<8x128xf32>, vector<8x8xf32> -> vector<8x8xf32>
    %cst_29 = arith.constant dense<0xFF800000> : vector<8xf32>
    %50 = vector.multi_reduction <maximumf>, %49, %cst_29 [1] : vector<8x8xf32> to vector<8xf32>
    %51 = vector.shape_cast %50 : vector<8xf32> to vector<8x1xf32>
    %52 = vector.broadcast %51 : vector<8x1xf32> to vector<8x8xf32>
    %53 = arith.subf %49, %52 : vector<8x8xf32>
    %54 = math.exp %53 : vector<8x8xf32>
    %cst_30 = arith.constant dense<0.000000e+00> : vector<8xf32>
    %55 = vector.multi_reduction <add>, %54, %cst_30 [1] : vector<8x8xf32> to vector<8xf32>
    %56 = vector.shape_cast %55 : vector<8xf32> to vector<8x1xf32>
    %cst_31 = arith.constant dense<0.000000e+00> : vector<8x128xf32>
    %57 = tpu.matmul %54, %48, %cst_31 {dimension_numbers = #tpu.dot_dimension_numbers<[1], [0], [0], [1], [0, 0, 1, 1], [], []>} : vector<8x8xf32>, vector<8x128xf32>, vector<8x128xf32> -> vector<8x128xf32>
    %58 = tpu.reciprocal %56 : vector<8x1xf32> -> vector<8x1xf32>
    %59 = vector.broadcast %58 : vector<8x1xf32> to vector<8x128xf32>
    %60 = arith.mulf %57, %59 : vector<8x128xf32>
    %c0_32 = arith.constant 0 : index
    %c256 = arith.constant 256 : index
    %61 = vector.load %arg9[%c0_32, %c256] : memref<8x512xf32, #tpu.memory_space<vmem>>, vector<8x128xf32>
    tpu.vector_store %arg9[%c0_32, %c256], %60 {strides = array<i32>} : memref<8x512xf32, #tpu.memory_space<vmem>>, vector<8x128xf32>,
    %62 = vector.extract_strided_slice %9 {offsets = [0, 384], sizes = [8, 128], strides = [1, 1]} : vector<8x512xf32> to vector<8x128xf32>
    %63 = vector.extract_strided_slice %11 {offsets = [0, 384], sizes = [8, 128], strides = [1, 1]} : vector<8x512xf32> to vector<8x128xf32>
    %64 = vector.extract_strided_slice %13 {offsets = [0, 384], sizes = [8, 128], strides = [1, 1]} : vector<8x512xf32> to vector<8x128xf32>
    %cst_33 = arith.constant dense<0.000000e+00> : vector<8x8xf32>
    %65 = tpu.matmul %62, %63, %cst_33 {dimension_numbers = #tpu.dot_dimension_numbers<[1], [1], [0], [0], [0, 0, 1, 0], [], []>} : vector<8x128xf32>, vector<8x128xf32>, vector<8x8xf32> -> vector<8x8xf32>
    %cst_34 = arith.constant dense<0xFF800000> : vector<8xf32>
    %66 = vector.multi_reduction <maximumf>, %65, %cst_34 [1] : vector<8x8xf32> to vector<8xf32>
    %67 = vector.shape_cast %66 : vector<8xf32> to vector<8x1xf32>
    %68 = vector.broadcast %67 : vector<8x1xf32> to vector<8x8xf32>
    %69 = arith.subf %65, %68 : vector<8x8xf32>
    %70 = math.exp %69 : vector<8x8xf32>
    %cst_35 = arith.constant dense<0.000000e+00> : vector<8xf32>
    %71 = vector.multi_reduction <add>, %70, %cst_35 [1] : vector<8x8xf32> to vector<8xf32>
    %72 = vector.shape_cast %71 : vector<8xf32> to vector<8x1xf32>
    %cst_36 = arith.constant dense<0.000000e+00> : vector<8x128xf32>
    %73 = tpu.matmul %70, %64, %cst_36 {dimension_numbers = #tpu.dot_dimension_numbers<[1], [0], [0], [1], [0, 0, 1, 1], [], []>} : vector<8x8xf32>, vector<8x128xf32>, vector<8x128xf32> -> vector<8x128xf32>
    %74 = tpu.reciprocal %72 : vector<8x1xf32> -> vector<8x1xf32>
    %75 = vector.broadcast %74 : vector<8x1xf32> to vector<8x128xf32>
    %76 = arith.mulf %73, %75 : vector<8x128xf32>
    %c0_37 = arith.constant 0 : index
    %c384 = arith.constant 384 : index
    %77 = vector.load %arg9[%c0_37, %c384] : memref<8x512xf32, #tpu.memory_space<vmem>>, vector<8x128xf32>
    tpu.vector_store %arg9[%c0_37, %c384], %76 {strides = array<i32>} : memref<8x512xf32, #tpu.memory_space<vmem>>, vector<8x128xf32>,
    %c0_38 = arith.constant 0 : index
    %c0_39 = arith.constant 0 : index
    %78 = vector.load %arg9[%c0_38, %c0_39] : memref<8x512xf32, #tpu.memory_space<vmem>>, vector<8x512xf32>
    %c0_40 = arith.constant 0 : index
    %c0_41 = arith.constant 0 : index
    %79 = vector.load %arg7[%c0_40, %c0_41] : memref<512x128xf32, #tpu.memory_space<vmem>>, vector<512x128xf32>
    %cst_42 = arith.constant dense<0.000000e+00> : vector<8x128xf32>
    %80 = tpu.matmul %78, %79, %cst_42 {dimension_numbers = #tpu.dot_dimension_numbers<[1], [0], [0], [1], [0, 0, 1, 1], [], []>} : vector<8x512xf32>, vector<512x128xf32>, vector<8x128xf32> -> vector<8x128xf32>
    %c0_43 = arith.constant 0 : index
    %c0_44 = arith.constant 0 : index
    %c0_45 = arith.constant 0 : index
    %81 = vector.load %arg8[%c0_43, %c0_44, %c0_45] : memref<1x8x128xf32, #tpu.memory_space<vmem>>, vector<1x8x128xf32>
    %82 = vector.shape_cast %81 : vector<1x8x128xf32> to vector<8x128xf32>
    %83 = vector.shape_cast %80 : vector<8x128xf32> to vector<1x8x128xf32>
    tpu.vector_store %arg8[%c0_43, %c0_44, %c0_45], %83 {strides = array<i32>} : memref<1x8x128xf32, #tpu.memory_space<vmem>>, vector<1x8x128xf32>,
    return
  }
  func.func @transform_0(%arg0: i32) -> (i32, i32, i32) {
    %c0_i32 = arith.constant 0 : i32
    %c0_i32_0 = arith.constant 0 : i32
    %c0_i32_1 = arith.constant 0 : i32
    return %arg0, %c0_i32, %c0_i32_0 : i32, i32, i32
  }
  func.func @transform_1(%arg0: i32) -> (i32, i32, i32) {
    %c0_i32 = arith.constant 0 : i32
    %c0_i32_0 = arith.constant 0 : i32
    %c0_i32_1 = arith.constant 0 : i32
    return %arg0, %c0_i32, %c0_i32_0 : i32, i32, i32
  }
  func.func @transform_2(%arg0: i32) -> (i32, i32, i32) {
    %c0_i32 = arith.constant 0 : i32
    %c0_i32_0 = arith.constant 0 : i32
    %c0_i32_1 = arith.constant 0 : i32
    return %arg0, %c0_i32, %c0_i32_0 : i32, i32, i32
  }
  func.func @transform_3(%arg0: i32) -> (i32, i32) {
    %c0_i32 = arith.constant 0 : i32
    %c0_i32_0 = arith.constant 0 : i32
    %c0_i32_1 = arith.constant 0 : i32
    return %c0_i32, %c0_i32_0 : i32, i32
  }
  func.func @transform_4(%arg0: i32) -> (i32, i32) {
    %c0_i32 = arith.constant 0 : i32
    %c0_i32_0 = arith.constant 0 : i32
    %c0_i32_1 = arith.constant 0 : i32
    return %c0_i32, %c0_i32_0 : i32, i32
  }
  func.func @transform_5(%arg0: i32) -> (i32, i32) {
    %c0_i32 = arith.constant 0 : i32
    %c0_i32_0 = arith.constant 0 : i32
    %c0_i32_1 = arith.constant 0 : i32
    return %c0_i32, %c0_i32_0 : i32, i32
  }
  func.func @transform_6(%arg0: i32) -> (i32, i32) {
    %c0_i32 = arith.constant 0 : i32
    %c0_i32_0 = arith.constant 0 : i32
    %c0_i32_1 = arith.constant 0 : i32
    return %c0_i32, %c0_i32_0 : i32, i32
  }
  func.func @transform_7(%arg0: i32) -> (i32, i32, i32) {
    %c0_i32 = arith.constant 0 : i32
    %c0_i32_0 = arith.constant 0 : i32
    %c0_i32_1 = arith.constant 0 : i32
    return %arg0, %c0_i32, %c0_i32_0 : i32, i32, i32
  }
}

</mosaic_0001>

<bundles_post_ra>
// kernel: tpu_custom_call.1
= control target key start
LH: loop header
LB: loop body
LE: loop exit
PB: predicated region body
PF: predicated region fallthrough
CT: control target
= control target key end

     0   :  { %s3317_s0 = inlined_call_operand.hbm [shape: f32[2,8,128], index: 0, kind: input, shape index: {}]   ;;  %s3318_s1 = inlined_call_operand.hbm [shape: f32[2,8,128], index: 1, kind: input, shape index: {}]   ;;  %s3319_s2 = inlined_call_operand.hbm [shape: f32[2,8,128], index: 2, kind: input, shape index: {}]   ;;  %s3320_s3 = inlined_call_operand.hbm [shape: f32[128,512], index: 3, kind: input, shape index: {}]   ;;  %s3321_s4 = inlined_call_operand.hbm [shape: f32[128,512], index: 4, kind: input, shape index: {}]   ;;  %s3322_s5 = inlined_call_operand.hbm [shape: f32[128,512], index: 5, kind: input, shape index: {}]   ;;  %s3323_s6 = inlined_call_operand.hbm [shape: f32[512,128], index: 6, kind: input, shape index: {}]   ;;  %s3324_s7 = inlined_call_operand.hbm [shape: f32[2,8,128], index: 7, kind: output, shape index: {}]  }
   0x1   :  { %3346 = sst [smem:[#allocation26_spill]] %s3318_s1 }
   0x2   :  { %3347 = sst [smem:[#allocation27_spill]] %s3320_s3 }
   0x3   :  { %3348 = sst [smem:[#allocation28_spill]] %s3322_s5 }
   0x4   :  { %3349 = sst [smem:[#allocation29_spill]] %s3324_s7 }
   0x5   :  { %12 = vsyncpa [#allocation4], 0 }
   0x6   :  { %14 = vsyncpa [#allocation4 + $0x1], 0 }
   0x7   :  { %15 = vsyncpa [#allocation7], 0 }
   0x8   :  { %17 = vsyncpa [#allocation7 + $0x1], 0 }
   0x9   :  { %18 = vsyncpa [#allocation10], 0 }
   0xa   :  { %19 = vsyncpa [#allocation13], 0 }
   0xb   :  { %20 = vsyncpa [#allocation5], 0 }
   0xc   :  { %22 = vsyncpa [#allocation5 + $0x1], 0  ;;  %s2910_s24 = smov 0   ;;  %s2912_s25 = smov 0  }
   0xd   :  { %s2914_s26 = smov 0   ;;  %s2916_s27 = smov 0  }
   0xe LB: > { %3350 = sst [smem:[#allocation21_spill]] %s2842_s24  ;;  %s2856_s28 = smov [#allocation9]   ;;  %s2854_s27 = sphi %s2916_s27, %s3387_s27   ;;  %s2850_s26 = sphi %s2914_s26, %s3391_s26   ;;  %s2846_s25 = sphi %s2912_s25, %s3390_s25   ;;  %s2842_s24 = sphi %s2910_s24, %s3389_s24  }
   0xf   : > { %3351 = sst [smem:[#allocation22_spill]] %s2854_s27  ;;  %s233_s29 = sshll.u32 %s2856_s28, 4  ;;  %s2936_s29 = int_to_ptr.vmem [resolvable:$true] %s233_s29 }
  0x10   : > { %s2931_s30 = sadd.s32 4294967295, %s2854_s27   ;;  %p2044_p0 = scmp.ge.s32.totalorder %s2854_s27, 1 }
  0x11   : > { %p3332_p1 = scmp.eq.s32.totalorder %s2931_s30, 0  ;;  %p221_p2 = scmp.lt.s32.totalorder %s2854_s27, 3 }
  0x12   : > { %s2857_s9 = smov [#allocation12]   ;;  %s3354_s3 = sld [smem:[#allocation27_spill]] }
  0x13   : > { %p2938_p3 = pnand %p2044_p0, %p221_p2  ;;  %s259_s10 = sshll.u32 %s2857_s9, 4  ;;  %s2951_s10 = int_to_ptr.vmem [resolvable:$true] %s259_s10 }
  0x15   : > { %s3352_s8 = scalar_select %p2938_p3, 1, 0 }
  0x16   : > { %p2479_p5 = pneg %p2938_p3 }
  0x18   : > { %p2947_p6 = pnand %p2479_p5, %p3332_p1  ;;  %s2574_s14 = scalar_lea.hbm %s3354_s3, 8192 }
  0x19   : > { %p2575_p7 = scmp.ne.s32.totalorder %s3354_s3, %s2574_s14  ;;  %p2581_p11 = scmp.lt.u32.totalorder %s2574_s14, %s3354_s3 }
  0x1a   : > { %s3353_s11 = scalar_select %p2947_p6, 1, 0 }
  0x1b   : > { %p2961_p8 = pneg %p2947_p6 }
  0x1d   : > { %s3355_s17 = scalar_select %p2961_p8, 1, 0 }
  0x1e   : > { %p2577_p9 = pnand %p2961_p8, %p2575_p7 }
  0x20   : > { %p2578_p10 = pneg %p2577_p9 }
  0x22   : > { %p2583_p12 = pnand %p2581_p11, %p2578_p10 }
  0x24   : > { %2586 = shalt.err (!%p2583_p12)
}
  0x25   : > { %s2587_s20 = scalar_lea.vmem %s2936_s29, 8192  ;;  %p2595_p5 = scmp.lt.s32.totalorder %s2936_s29, %s2936_s29 }
  0x26   : > { %p2588_p13 = scmp.ne.s32.totalorder %s2936_s29, %s2587_s20  ;;  %p2596_p4 = scmp.lt.s32.totalorder %s2587_s20, %s2587_s20 }
  0x28   : > { %p2590_p0 = pnand %p2588_p13, %p2961_p8  ;;  %p2597_p7 = por %p2596_p4, %p2595_p5 }
  0x2a   : > { %p2591_p2 = pneg %p2590_p0 }
  0x2c   : > { %p2598_p9 = pnand %p2597_p7, %p2591_p2 }
  0x2e   : > { %2601 = shalt.err (!%p2598_p9)
}
  0x2f   : > { %s3327_s21 = smov 512   ;;  %s3328_s22 = smov 32  }
  0x30   : > { %2482 = dma.hbm_to_vmem [thread:$0]  (!%p2947_p6), %s3354_s3, 8192, %s2936_s29, [#allocation10], %s3327_s21, %s3327_s21, %s3328_s22  }
  0x31   : > { %s3356_s5 = sld [smem:[#allocation28_spill]] }
  0x37   : > { %s2602_s13 = scalar_lea.hbm %s3356_s5, 8192 }
  0x38   : > { %p2603_p4 = scmp.ne.s32.totalorder %s3356_s5, %s2602_s13  ;;  %p2609_p12 = scmp.lt.u32.totalorder %s2602_s13, %s3356_s5 }
  0x3a   : > { %p2605_p10 = pnand %p2603_p4, %p2961_p8 }
  0x3c   : > { %p2606_p11 = pneg %p2605_p10 }
  0x3e   : > { %p2611_p13 = pnand %p2609_p12, %p2606_p11 }
  0x40   : > { %2614 = shalt.err (!%p2611_p13)
}
  0x41   : > { %s2615_s29 = scalar_lea.vmem %s2951_s10, 8192  ;;  %p2623_p7 = scmp.lt.s32.totalorder %s2951_s10, %s2951_s10 }
  0x42   : > { %p2616_p0 = scmp.ne.s32.totalorder %s2951_s10, %s2615_s29  ;;  %p2624_p9 = scmp.lt.s32.totalorder %s2615_s29, %s2615_s29 }
  0x44   : > { %p2618_p2 = pnand %p2616_p0, %p2961_p8  ;;  %p2625_p4 = por %p2624_p9, %p2623_p7 }
  0x46   : > { %p2619_p5 = pneg %p2618_p2 }
  0x48   : > { %p2626_p10 = pnand %p2625_p4, %p2619_p5 }
  0x4a   : > { %2629 = shalt.err (!%p2626_p10)
}
  0x4b   : > { %2488 = dma.hbm_to_vmem [thread:$0]  (!%p2947_p6), %s3356_s5, 8192, %s2951_s10, [#allocation13], %s3327_s21, %s3327_s21, %s3328_s22  }
  0x4c   : > { %s2043_s23 = sadd.s32 4294967294, %s2854_s27   ;;  %s3013_s28 = sadd.s32 1, %s2854_s27  }
  0x4d   : > { %3357 = sst [smem:[#allocation23_spill]] %s3013_s28  ;;  %s32_s9 = ssub.s32 %s2854_s27, %s3013_s28 }
  0x4e   : > { %s35_s12 = sadd.s32 1, %s2850_s26  ;;  %p33_p11 = scmp.eq.s32.totalorder %s32_s9, 0 }
  0x4f   : > { %p42_p12 = scmp.ne.s32.totalorder %s2850_s26, %s2846_s25  ;;  %p43_p13 = scmp.eq.s32.totalorder %s2854_s27, 0 }
  0x50   : > { %p48_p0 = scmp.ne.s32.totalorder %s2846_s25, %s2842_s24  ;;  %p208_p7 = scmp.eq.s32.totalorder %s2931_s30, 1 }
  0x51   : > { %s3024_s13 = scalar_select %p33_p11, %s2850_s26, %s35_s12  }
  0x52   : > { %p44_p2 = por %p43_p13, %p42_p12  ;;  %p3028_p5 = por %p3332_p1, %p48_p0 }
  0x53   : > { %3358 = sst [smem:[#allocation24_spill]] %s3024_s13  ;;  %p214_p9 = scmp.eq.s32.totalorder %s2043_s23, 1 }
  0x54   : > { %s3359_s14 = scalar_select %p3028_p5, 1, 0 }
  0x55   : > { %p2510_p4 = scmp.lt.s32.totalorder %s2854_s27, 2  ;;  %s3326_s10 = sand.u32 1, %s2850_s26  }
  0x56   : > { %p3035_p10 = por %p208_p7, %p42_p12  ;;  %p3039_p3 = por %p214_p9, %p48_p0 }
  0x57   : > { %s3045_s18 = sshll.u32 %s3326_s10, 3  ;;  %s3048_s29 = sshll.u32 %s2854_s27, 7 }
  0x58   : > { %s3360_s15 = scalar_select %p3035_p10, 1, 0 }
  0x59   : > { %s3361_s16 = scalar_select %p3039_p3, 1, 0 }
  0x5a   : > { %p3050_p11 = pnand %p2510_p4, %p44_p2  ;;  %s304_s20 = sand.u32 1, %s2854_s27  }
  0x5b   : > { %3362 = sst [smem:[#allocation25_spill]] %s3361_s16  ;;  %s308_s10 = scalar_lea.vmem [#allocation6], %s3045_s18 }
  0x5c   : > { %s3363_s19 = scalar_select %p3050_p11, 1, 0 }
  0x5d   : > { %s3364_s1 = sld [smem:[#allocation26_spill]]  ;;  %s315_s21 = sshll.u32 %s308_s10, 4  ;;  %s3062_s21 = int_to_ptr.vmem [resolvable:$true] %s315_s21 }
  0x5e   : > { %s2860_s22 = smov [#allocation11]   ;;  %s3066_s5 = scalar_lea.sflag [#allocation7], %s304_s20 }
  0x5f   : > { %s3064_s3 = sshll.u32 %s2860_s22, 4  ;;  %p3072_p13 = pneg %p3050_p11  ;;  %s247_s3 = int_to_ptr.vmem [resolvable:$true] %s3064_s3 }
  0x61   : > { %s3365_s23 = scalar_select %p3072_p13, 1, 0 }
  0x63   : > { %s3059_s12 = scalar_lea.hbm %s3364_s1, %s3048_s29  ;;  %s2635_s28 = scalar_lea.hbm %s3364_s1, 256 }
  0x64   : > { %s2630_s13 = scalar_lea.hbm %s3059_s12, 128  ;;  %p2636_p7 = scmp.lt.u32.totalorder %s3059_s12, %s3364_s1 }
  0x65   : > { %p2631_p12 = scmp.ne.s32.totalorder %s3059_s12, %s2630_s13  ;;  %p2637_p9 = scmp.lt.u32.totalorder %s2635_s28, %s2630_s13 }
  0x66   : > { %p2639_p1 = scmp.lt.u32.totalorder %s2630_s13, %s3059_s12 }
  0x67   : > { %p2633_p0 = pnand %p3072_p13, %p2631_p12  ;;  %p2638_p4 = por %p2637_p9, %p2636_p7 }
  0x69   : > { %p2634_p2 = pneg %p2633_p0  ;;  %p2640_p3 = por %p2639_p1, %p2638_p4 }
  0x6b   : > { %p2641_p10 = pnand %p2640_p3, %p2634_p2 }
  0x6d   : > { %2644 = shalt.err (!%p2641_p10)
}
  0x6e   : > { %s2645_s20 = scalar_lea.vmem %s3062_s21, 128  ;;  %s2861_s9 = smov [#allocation6]  }
  0x6f   : > { %p2646_p12 = scmp.ne.s32.totalorder %s3062_s21, %s2645_s20  ;;  %s2650_s10 = sshll.u32 %s2861_s9, 4  ;;  %s2651_s10 = int_to_ptr.vmem [resolvable:$false] %s2650_s10 }
  0x70   : > { %s2652_s27 = scalar_lea.vmem %s2651_s10, 256  ;;  %p2653_p6 = scmp.lt.s32.totalorder %s3062_s21, %s2651_s10 }
  0x71   : > { %p2648_p0 = pnand %p2646_p12, %p3072_p13  ;;  %p2654_p8 = scmp.lt.s32.totalorder %s2652_s27, %s2645_s20 }
  0x73   : > { %p2649_p5 = pneg %p2648_p0  ;;  %p2655_p7 = por %p2654_p8, %p2653_p6 }
  0x75   : > { %p2656_p9 = pnand %p2655_p7, %p2649_p5 }
  0x77   : > { %2659 = shalt.err (!%p2656_p9)
}
  0x78   : > { %2498 = dma.hbm_to_vmem [thread:$0]  (!%p3050_p11), %s3059_s12, 128, %s3062_s21, %s3066_s5  }
  0x79   : > { %s2660_s22 = scalar_lea.hbm %s3321_s4, 8192  ;;  %p3366_p3 = scmp.ne.s32.totalorder %s3355_s17, 0 }
  0x7a   : > { %p2661_p1 = scmp.ne.s32.totalorder %s3321_s4, %s2660_s22  ;;  %p2667_p5 = scmp.lt.u32.totalorder %s2660_s22, %s3321_s4 }
  0x7c   : > { %p2663_p6 = pnand %p2661_p1, %p3366_p3 }
  0x7e   : > { %p2664_p8 = pneg %p2663_p6 }
  0x80   : > { %p2669_p10 = pnand %p2667_p5, %p2664_p8 }
  0x82   : > { %2672 = shalt.err (!%p2669_p10)
}
  0x83   : > { %s2673_s27 = scalar_lea.vmem %s247_s3, 8192  ;;  %p2681_p0 = scmp.lt.s32.totalorder %s247_s3, %s247_s3 }
  0x84   : > { %p2674_p2 = scmp.ne.s32.totalorder %s247_s3, %s2673_s27  ;;  %p2682_p7 = scmp.lt.s32.totalorder %s2673_s27, %s2673_s27 }
  0x86   : > { %p2676_p4 = pnand %p2674_p2, %p3366_p3  ;;  %p2683_p9 = por %p2682_p7, %p2681_p0 }
  0x88   : > { %p2677_p12 = pneg %p2676_p4 }
  0x8a   : > { %p2684_p11 = pnand %p2683_p9, %p2677_p12 }
  0x8c   : > { %2687 = shalt.err (!%p2684_p11)
}
  0x8d   : > { %p3367_p1 = scmp.ne.s32.totalorder %s3353_s11, 0  ;;  %s3368_s1 = smov 32  }
  0x8e   : > { %s3369_s21 = smov 512   ;;  %s2862_s13 = smov [#allocation14]  }
  0x8f   : > { %2485 = dma.hbm_to_vmem [thread:$0]  (!%p3367_p1), %s3321_s4, 8192, %s247_s3, [#allocation10], %s3369_s21, %s3369_s21, %s3368_s1  }
  0x90   : > { %s272_s22 = sshll.u32 %s2862_s13, 4  ;;  %s2688_s10 = scalar_lea.hbm %s3323_s6, 8192  ;;  %s273_s22 = int_to_ptr.vmem [resolvable:$true] %s272_s22 }
  0x91   : > { %p2689_p11 = scmp.ne.s32.totalorder %s3323_s6, %s2688_s10  ;;  %p2695_p5 = scmp.lt.u32.totalorder %s2688_s10, %s3323_s6 }
  0x93   : > { %p2691_p6 = pnand %p2689_p11, %p3366_p3 }
  0x95   : > { %p2692_p8 = pneg %p2691_p6 }
  0x97   : > { %p2697_p10 = pnand %p2695_p5, %p2692_p8 }
  0x99   : > { %2700 = shalt.err (!%p2697_p10)
}
  0x9a   : > { %s2701_s3 = scalar_lea.vmem %s273_s22, 8192  ;;  %p2709_p0 = scmp.lt.s32.totalorder %s273_s22, %s273_s22 }
  0x9b   : > { %p2702_p2 = scmp.ne.s32.totalorder %s273_s22, %s2701_s3  ;;  %p2710_p7 = scmp.lt.s32.totalorder %s2701_s3, %s2701_s3 }
  0x9d   : > { %p2704_p4 = pnand %p2702_p2, %p3366_p3  ;;  %p2711_p9 = por %p2710_p7, %p2709_p0 }
  0x9f   : > { %p2705_p12 = pneg %p2704_p4 }
  0xa1   : > { %p2712_p13 = pnand %p2711_p9, %p2705_p12 }
  0xa3   : > { %2715 = shalt.err (!%p2712_p13)
}
  0xa4   : > { %s2863_s16 = smov 128   ;;  %s2864_s7 = smov 8  }
  0xa5   : > { %2491 = dma.hbm_to_vmem [thread:$0]  (!%p3367_p1), %s3323_s6, 8192, %s273_s22, [#allocation13], %s2863_s16, %s2863_s16, %s2864_s7  }
  0xa6   : > { %s3140_s12 = scalar_lea.hbm %s3317_s0, %s3048_s29  ;;  %s290_s28 = scalar_lea.vmem [#allocation3], %s3045_s18 }
  0xa7   : > { %s297_s13 = sshll.u32 %s290_s28, 4  ;;  %s3370_s9 = sand.u32 1, %s2850_s26   ;;  %s298_s13 = int_to_ptr.vmem [resolvable:$true] %s297_s13 }
  0xa8   : > { %s287_s20 = scalar_lea.sflag [#allocation4], %s3370_s9  ;;  %s2716_s10 = scalar_lea.hbm %s3140_s12, 128 }
  0xa9   : > { %p2717_p13 = scmp.ne.s32.totalorder %s3140_s12, %s2716_s10  ;;  %p3371_p3 = scmp.ne.s32.totalorder %s3365_s23, 0 }
  0xaa   : > { %s2721_s27 = scalar_lea.hbm %s3317_s0, 256  ;;  %p2722_p1 = scmp.lt.u32.totalorder %s3140_s12, %s3317_s0 }
  0xab   : > { %p2719_p11 = pnand %p2717_p13, %p3371_p3  ;;  %p2723_p8 = scmp.lt.u32.totalorder %s2721_s27, %s2716_s10 }
  0xac   : > { %p2725_p10 = scmp.lt.u32.totalorder %s2716_s10, %s3140_s12 }
  0xad   : > { %p2720_p6 = pneg %p2719_p11  ;;  %p2724_p5 = por %p2723_p8, %p2722_p1 }
  0xaf   : > { %p2726_p2 = por %p2725_p10, %p2724_p5 }
  0xb1   : > { %p2727_p4 = pnand %p2726_p2, %p2720_p6 }
  0xb3   : > { %2730 = shalt.err (!%p2727_p4)
}
  0xb4   : > { %s2731_s7 = scalar_lea.vmem %s298_s13, 128  ;;  %s2865_s24 = smov [#allocation3]  }
  0xb5   : > { %p2732_p12 = scmp.ne.s32.totalorder %s298_s13, %s2731_s7  ;;  %s2736_s1 = sshll.u32 %s2865_s24, 4  ;;  %s2737_s1 = int_to_ptr.vmem [resolvable:$false] %s2736_s1 }
  0xb6   : > { %s2738_s17 = scalar_lea.vmem %s2737_s1, 256  ;;  %p2739_p9 = scmp.lt.s32.totalorder %s298_s13, %s2737_s1 }
  0xb7   : > { %p2734_p0 = pnand %p2732_p12, %p3371_p3  ;;  %p2740_p13 = scmp.lt.s32.totalorder %s2738_s17, %s2731_s7 }
  0xb9   : > { %p2735_p7 = pneg %p2734_p0  ;;  %p2741_p11 = por %p2740_p13, %p2739_p9 }
  0xbb   : > { %p2742_p1 = pnand %p2741_p11, %p2735_p7 }
  0xbd   : > { %2745 = shalt.err (!%p2742_p1)
}
  0xbe   : > { %p3372_p8 = scmp.ne.s32.totalorder %s3363_s19, 0  ;;  %s3166_s9 = scalar_lea.hbm %s3319_s2, %s3048_s29 }
  0xbf   : > { %s326_s10 = scalar_lea.vmem [#allocation8], %s3045_s18  ;;  %s2746_s22 = scalar_lea.hbm %s3166_s9, 128 }
  0xc0   : > { %2495 = dma.hbm_to_vmem [thread:$0]  (!%p3372_p8), %s3140_s12, 128, %s298_s13, %s287_s20  }
  0xc1   : > { %s333_s11 = sshll.u32 %s326_s10, 4  ;;  %p2747_p6 = scmp.ne.s32.totalorder %s3166_s9, %s2746_s22  ;;  %s334_s11 = int_to_ptr.vmem [resolvable:$true] %s333_s11 }
  0xc2   : > { %s2751_s12 = scalar_lea.hbm %s3319_s2, 256  ;;  %p2752_p2 = scmp.lt.u32.totalorder %s3166_s9, %s3319_s2 }
  0xc3   : > { %p2749_p5 = pnand %p2747_p6, %p3371_p3  ;;  %p2753_p4 = scmp.lt.u32.totalorder %s2751_s12, %s2746_s22 }
  0xc4   : > { %p2755_p0 = scmp.lt.u32.totalorder %s2746_s22, %s3166_s9 }
  0xc5   : > { %p2750_p10 = pneg %p2749_p5  ;;  %p2754_p12 = por %p2753_p4, %p2752_p2 }
  0xc7   : > { %p2756_p7 = por %p2755_p0, %p2754_p12 }
  0xc9   : > { %p2757_p9 = pnand %p2756_p7, %p2750_p10 }
  0xcb   : > { %2760 = shalt.err (!%p2757_p9)
}
  0xcc   : > { %s2761_s18 = scalar_lea.vmem %s334_s11, 128  ;;  %s2866_s29 = smov [#allocation8]  }
  0xcd   : > { %p2762_p13 = scmp.ne.s32.totalorder %s334_s11, %s2761_s18  ;;  %s2766_s16 = sshll.u32 %s2866_s29, 4  ;;  %s2767_s16 = int_to_ptr.vmem [resolvable:$false] %s2766_s16 }
  0xce   : > { %s2768_s7 = scalar_lea.vmem %s2767_s16, 256  ;;  %p2769_p6 = scmp.lt.s32.totalorder %s334_s11, %s2767_s16 }
  0xcf   : > { %p2764_p11 = pnand %p2762_p13, %p3371_p3  ;;  %p2770_p5 = scmp.lt.s32.totalorder %s2768_s7, %s2761_s18 }
  0xd1   : > { %p2765_p1 = pneg %p2764_p11  ;;  %p2771_p8 = por %p2770_p5, %p2769_p6 }
  0xd3   : > { %p2772_p2 = pnand %p2771_p8, %p2765_p1 }
  0xd5   : > { %2775 = shalt.err (!%p2772_p2)
}
  0xd6   : > { %p3373_p4 = scmp.ne.s32.totalorder %s3363_s19, 0  ;;  %p3374_p10 = scmp.ne.s32.totalorder %s3352_s8, 0 }
  0xd7   : > { %s3190_s23 = sand.u32 (!%p3374_p10), 1, %s2846_s25   ;;  %p3375_p3 = scmp.ne.s32.totalorder (!%p3374_p10), %s3359_s14, 0 }
  0xd8   : > { %2501 = dma.hbm_to_vmem [thread:$0]  (!%p3373_p4), %s3166_s9, 128, %s334_s11, %s3066_s5  }
  0xd9   : > { %342 = sbr.rel (%p3374_p10) target bundleno = 1345 (0x541), region = 48  ;;  %s3193_s24 = sshll.u32 (!%p3374_p10), %s3190_s23, 3 }
  0xda   : > { %s345_s1 = scalar_lea.sflag (!%p3374_p10), [#allocation4], %s3190_s23  ;;  %s348_s17 = scalar_lea.vmem (!%p3374_p10), [#allocation3], %s3193_s24 }
  0xe0   : > { %2821 = dma.done.wait (%p3375_p3), %s345_s1, 128  }
  0xe1   : > { %2823 = vsyncadd (%p3375_p3), %s345_s1, 4294967168  ;;  %s353_s5 = sand.u32 1, %s2931_s30   ;;  %s357_s19 = scalar_lea.vmem [#allocation6], %s3193_s24 }
  0xe2   : > { %s354_s8 = scalar_lea.sflag [#allocation7], %s353_s5 }
  0xe3   : > { %2825 = dma.done.wait (%p3375_p3), %s354_s8, 256  }
  0xe4   : > { %2827 = vsyncadd (%p3375_p3), %s354_s8, 4294967040  ;;  %s366_s21 = scalar_lea.vmem [#allocation8], %s3193_s24  ;;  %p3376_p8 = scmp.eq.s32.totalorder %s2931_s30, 0 }
  0xe6   : > { %2829 = dma.done.wait (%p3376_p8), [#allocation10], 16384   ;;  %p3377_p12 = pmov %p3376_p8 }
  0xe7   : > { %p3378_p0 = pmov %p3376_p8 }
  0xe8   : > { %2831 = vsyncadd (%p3377_p12), [#allocation10], 4294950912 }
  0xe9   : > { %2833 = dma.done.wait (%p3378_p0), [#allocation13], 16384   ;;  %p3379_p7 = pmov %p3378_p0 }
  0xea   : > { %v2867_v0 = vmov 0.0   ;;  %v427_v1 = vld [vmem:[#allocation9 + $0x8] sm:$0xff]  ;;  %v426_v3 = vld [vmem:[#allocation9] sm:$0xff]  ;;  %v429_v12 = vld [vmem:[#allocation9 + $0x18] sm:$0xff]  ;;  %vm2868_vm0 = vmmov 0   ;;  %vm1118_vm1 = vcmask 64512  }
  0xeb   : > { %2835 = vsyncadd (%p3379_p7), [#allocation13], 4294950912  ;;  %554 = vmatprep.mubr.f32.mxu0 %v2867_v0  ;;  %625 = vmatprep.mubr.f32.mxu1 %v2867_v0  ;;  %v431_v2 = vld [vmem:[#allocation9 + $0x28] sm:$0xff]  ;;  %v430_v5 = vld [vmem:[#allocation9 + $0x20] sm:$0xff]  ;;  %s2070_s14 = sshll.u32 %s2931_s30, 7  ;;  %s422_s28 = scalar_lea.vmem [#allocation15], %s3193_s24 }
  0xec   : > { %v2199_v4 = vpack.c.bf16 %v431_v2, %v427_v1  ;;  %v435_v6 = vld [vmem:[#allocation9 + $0x48] sm:$0xff]  ;;  %v2201_v8 = vpack.c.bf16 %v430_v5, %v426_v3  ;;  %v434_v10 = vld [vmem:[#allocation9 + $0x40] sm:$0xff]  ;;  %v433_v13 = vld [vmem:[#allocation9 + $0x38] sm:$0xff]  ;;  %s1892_s9 = sshll.u32 %s422_s28, 4  ;;  %s3380_s22 = sld [smem:[#allocation29_spill]]  ;;  %s3275_s9 = int_to_ptr.vmem [resolvable:$true] %s1892_s9 }
  0xed   : > { %v439_v7 = vld [vmem:[#allocation9 + $0x68] sm:$0xff]  ;;  %v438_v11 = vld [vmem:[#allocation9 + $0x60] sm:$0xff]  ;;  %v2231_v17 = vpack.c.bf16 %v433_v13, %v429_v12  ;;  %v428_v18 = vld [vmem:[#allocation9 + $0x10] sm:$0xff]  ;;  %s1879_s3 = scalar_lea.sflag [#allocation5], %s3190_s23  ;;  %s2776_s12 = scalar_lea.vmem %s3275_s9, 128 }
  0xee   : > { %v2203_v9 = vpack.c.bf16 %v439_v7, %v435_v6  ;;  %2200 = vmatprep.subr.bf16.mxu0 %v2199_v4  ;;  %v443_v14 = vld [vmem:[#allocation9 + $0x88] sm:$0xff]  ;;  %v2205_v16 = vpack.c.bf16 %v438_v11, %v434_v10  ;;  %v432_v19 = vld [vmem:[#allocation9 + $0x30] sm:$0xff]  ;;  %v442_v20 = vld [vmem:[#allocation9 + $0x80] sm:$0xff]  ;;  %p2777_p9 = scmp.ne.s32.totalorder %s3275_s9, %s2776_s12  ;;  %p3381_p13 = scmp.ne.s32.totalorder %s3360_s15, 0 }
  0xef   : > { %v447_v15 = vld [vmem:[#allocation9 + $0xa8] sm:$0xff]  ;;  %2202 = vmatpush1.bf16.msra.mxu0 %v2201_v8  ;;  %v2233_v22 = vpack.c.bf16 %v432_v19, %v428_v18  ;;  %v446_v23 = vld [vmem:[#allocation9 + $0xa0] sm:$0xff]  ;;  %v437_v24 = vld [vmem:[#allocation9 + $0x58] sm:$0xff]  ;;  %2232 = vmatprep.subr.bf16.mxu1 %v2231_v17  ;;  %s2869_s30 = smov [#allocation15]  }
  0xf0   : > { %2204 = vmatprep.subr.bf16.mxu0 %v2203_v9  ;;  %v2207_v21 = vpack.c.bf16 %v447_v15, %v443_v14  ;;  %v441_v25 = vld [vmem:[#allocation9 + $0x78] sm:$0xff]  ;;  %v451_v27 = vld [vmem:[#allocation9 + $0xc8] sm:$0xff]  ;;  %v436_v29 = vld [vmem:[#allocation9 + $0x50] sm:$0xff]  ;;  %v2209_v31 = vpack.c.bf16 %v446_v23, %v442_v20  ;;  %p2778_p11 = pnand %p2777_p9, %p3381_p13  ;;  %s2780_s13 = sshll.u32 %s2869_s30, 4  ;;  %s2781_s13 = int_to_ptr.vmem [resolvable:$false] %s2780_s13 }
  0xf1   : > { %v2235_v26 = vpack.c.bf16 %v441_v25, %v437_v24  ;;  %v455_v28 = vld [vmem:[#allocation9 + $0xe8] sm:$0xff]  ;;  %2234 = vmatpush1.bf16.msra.mxu1 %v2233_v22  ;;  %v440_v30 = vld [vmem:[#allocation9 + $0x70] sm:$0xff]  ;;  %v450_v33 = vld [vmem:[#allocation9 + $0xc0] sm:$0xff]  ;;  %s2782_s20 = scalar_lea.vmem %s2781_s13, 256  ;;  %p2783_p6 = scmp.lt.s32.totalorder %s3275_s9, %s2781_s13 }
  0xf2   : > { %v2237_v32 = vpack.c.bf16 %v440_v30, %v436_v29  ;;  %v445_v34 = vld [vmem:[#allocation9 + $0x98] sm:$0xff]  ;;  %v2211_v36 = vpack.c.bf16 %v455_v28, %v451_v27  ;;  %v454_v37 = vld [vmem:[#allocation9 + $0xe0] sm:$0xff]  ;;  %v444_v39 = vld [vmem:[#allocation9 + $0x90] sm:$0xff]  ;;  %s3273_s27 = scalar_lea.hbm %s3380_s22, %s2070_s14  ;;  %p2779_p1 = pneg %p2778_p11 }
  0xf3   : > { %2206 = vmatpush1.bf16.msra.mxu0 %v2205_v16  ;;  %2236 = vmatprep.subr.bf16.mxu1 %v2235_v26  ;;  %v449_v35 = vld [vmem:[#allocation9 + $0xb8] sm:$0xff]  ;;  %v448_v40 = vld [vmem:[#allocation9 + $0xb0] sm:$0xff]  ;;  %v459_v41 = vld [vmem:[#allocation9 + $0x108] sm:$0xff]  ;;  %v2213_v46 = vpack.c.bf16 %v454_v37, %v450_v33  ;;  %p2784_p5 = scmp.lt.s32.totalorder %s2782_s20, %s2776_s12 }
  0xf4   : > { %2208 = vmatprep.subr.bf16.mxu0 %v2207_v21  ;;  %v2239_v38 = vpack.c.bf16 %v449_v35, %v445_v34  ;;  %v463_v42 = vld [vmem:[#allocation9 + $0x128] sm:$0xff]  ;;  %v453_v43 = vld [vmem:[#allocation9 + $0xd8] sm:$0xff]  ;;  %v2241_v44 = vpack.c.bf16 %v448_v40, %v444_v39  ;;  %v458_v47 = vld [vmem:[#allocation9 + $0x100] sm:$0xff] }
  0xf5   : > { %2238 = vmatpush1.bf16.msra.mxu1 %v2237_v32  ;;  %v457_v45 = vld [vmem:[#allocation9 + $0xf8] sm:$0xff]  ;;  %v452_v49 = vld [vmem:[#allocation9 + $0xd0] sm:$0xff]  ;;  %v2215_v51 = vpack.c.bf16 %v463_v42, %v459_v41  ;;  %v462_v52 = vld [vmem:[#allocation9 + $0x120] sm:$0xff]  ;;  %p2785_p2 = por %p2784_p5, %p2783_p6 }
  0xf6   : > { %2240 = vmatprep.subr.bf16.mxu1 %v2239_v38  ;;  %v2243_v48 = vpack.c.bf16 %v457_v45, %v453_v43  ;;  %v456_v50 = vld [vmem:[#allocation9 + $0xf0] sm:$0xff]  ;;  %v461_v53 = vld [vmem:[#allocation9 + $0x118] sm:$0xff]  ;;  %v467_v55 = vld [vmem:[#allocation9 + $0x148] sm:$0xff]  ;;  %v2217_v58 = vpack.c.bf16 %v462_v52, %v458_v47 }
  0xf7   : > { %2210 = vmatpush1.bf16.msra.mxu0 %v2209_v31  ;;  %v465_v54 = vld [vmem:[#allocation9 + $0x138] sm:$0xff]  ;;  %v471_v56 = vld [vmem:[#allocation9 + $0x168] sm:$0xff]  ;;  %v2245_v57 = vpack.c.bf16 %v456_v50, %v452_v49  ;;  %v466_v59 = vld [vmem:[#allocation9 + $0x140] sm:$0xff]  ;;  %p2786_p4 = pnand %p2785_p2, %p2779_p1 }
  0xf8   : > { %2212 = vmatprep.subr.bf16.mxu0 %v2211_v36  ;;  %v2247_v60 = vpack.c.bf16 %v465_v54, %v461_v53  ;;  %v460_v61 = vld [vmem:[#allocation9 + $0x110] sm:$0xff]  ;;  %v2219_v63 = vpack.c.bf16 %v471_v56, %v467_v55  ;;  %v470_v1 = vld [vmem:[#allocation9 + $0x160] sm:$0xff]  ;;  %v469_v2 = vld [vmem:[#allocation9 + $0x158] sm:$0xff] }
  0xf9   : > { %2242 = vmatpush1.bf16.msra.mxu1 %v2241_v44  ;;  %v464_v62 = vld [vmem:[#allocation9 + $0x130] sm:$0xff]  ;;  %v473_v3 = vld [vmem:[#allocation9 + $0x178] sm:$0xff]  ;;  %v475_v4 = vld [vmem:[#allocation9 + $0x188] sm:$0xff]  ;;  %v2221_v7 = vpack.c.bf16 %v470_v1, %v466_v59 }
  0xfa   : > { %2244 = vmatprep.subr.bf16.mxu1 %v2243_v48  ;;  %v479_v5 = vld [vmem:[#allocation9 + $0x1a8] sm:$0xff]  ;;  %v2249_v6 = vpack.c.bf16 %v464_v62, %v460_v61  ;;  %v474_v8 = vld [vmem:[#allocation9 + $0x180] sm:$0xff]  ;;  %v2251_v9 = vpack.c.bf16 %v473_v3, %v469_v2  ;;  %v468_v10 = vld [vmem:[#allocation9 + $0x150] sm:$0xff] }
  0xfb   : > { %2214 = vmatpush1.bf16.msra.mxu0 %v2213_v46  ;;  %v472_v11 = vld [vmem:[#allocation9 + $0x170] sm:$0xff]  ;;  %v2223_v12 = vpack.c.bf16 %v479_v5, %v475_v4  ;;  %v478_v13 = vld [vmem:[#allocation9 + $0x1a0] sm:$0xff]  ;;  %v477_v14 = vld [vmem:[#allocation9 + $0x198] sm:$0xff] }
  0xfc   : > { %2216 = vmatprep.subr.bf16.mxu0 %v2215_v51  ;;  %v481_v15 = vld [vmem:[#allocation9 + $0x1b8] sm:$0xff]  ;;  %v483_v16 = vld [vmem:[#allocation9 + $0x1c8] sm:$0xff]  ;;  %v2253_v18 = vpack.c.bf16 %v472_v11, %v468_v10  ;;  %v2225_v19 = vpack.c.bf16 %v478_v13, %v474_v8  ;;  %v482_v20 = vld [vmem:[#allocation9 + $0x1c0] sm:$0xff] }
  0xfd   : > { %2246 = vmatpush1.bf16.msra.mxu1 %v2245_v57  ;;  %v487_v17 = vld [vmem:[#allocation9 + $0x1e8] sm:$0xff]  ;;  %v2255_v21 = vpack.c.bf16 %v481_v15, %v477_v14  ;;  %v476_v22 = vld [vmem:[#allocation9 + $0x190] sm:$0xff]  ;;  %v486_v25 = vld [vmem:[#allocation9 + $0x1e0] sm:$0xff] }
  0xfe   : > { %2248 = vmatprep.subr.bf16.mxu1 %v2247_v60  ;;  %v480_v23 = vld [vmem:[#allocation9 + $0x1b0] sm:$0xff]  ;;  %v2227_v24 = vpack.c.bf16 %v487_v17, %v483_v16  ;;  %v485_v26 = vld [vmem:[#allocation9 + $0x1d8] sm:$0xff]  ;;  %v637_v28 = vld [vmem:[#allocation11 + $0x8] sm:$0xff]  ;;  %v2229_v31 = vpack.c.bf16 %v486_v25, %v482_v20 }
  0xff   : > { %2218 = vmatpush1.bf16.msra.mxu0 %v2217_v58  ;;  %v489_v27 = vld [vmem:[#allocation9 + $0x1f8] sm:$0xff]  ;;  %v641_v29 = vld [vmem:[#allocation11 + $0x28] sm:$0xff]  ;;  %v2257_v30 = vpack.c.bf16 %v480_v23, %v476_v22  ;;  %v636_v32 = vld [vmem:[#allocation11] sm:$0xff] }
 0x100   : > { %2220 = vmatprep.subr.bf16.mxu0 %v2219_v63  ;;  %v2259_v33 = vpack.c.bf16 %v489_v27, %v485_v26  ;;  %v484_v34 = vld [vmem:[#allocation9 + $0x1d0] sm:$0xff]  ;;  %v2263_v36 = vpack.c.bf16 %v641_v29, %v637_v28  ;;  %v640_v37 = vld [vmem:[#allocation11 + $0x20] sm:$0xff]  ;;  %v639_v38 = vld [vmem:[#allocation11 + $0x18] sm:$0xff] }
 0x101   : > { %2250 = vmatpush1.bf16.msra.mxu1 %v2249_v6  ;;  %v488_v35 = vld [vmem:[#allocation9 + $0x1f0] sm:$0xff]  ;;  %v643_v39 = vld [vmem:[#allocation11 + $0x38] sm:$0xff]  ;;  %v645_v40 = vld [vmem:[#allocation11 + $0x48] sm:$0xff]  ;;  %v2265_v44 = vpack.c.bf16 %v640_v37, %v636_v32 }
 0x102   : > { %2252 = vmatprep.subr.bf16.mxu1 %v2251_v9  ;;  %v649_v41 = vld [vmem:[#allocation11 + $0x68] sm:$0xff]  ;;  %v423_v42 = vld [vmem:[%s348_s17] sm:$0xff]  ;;  %v2261_v43 = vpack.c.bf16 %v488_v35, %v484_v34  ;;  %v644_v45 = vld [vmem:[#allocation11 + $0x40] sm:$0xff]  ;;  %v2295_v46 = vpack.c.bf16 %v643_v39, %v639_v38 }
 0x103   : > { %2222 = vmatpush1.bf16.msra.mxu0 %v2221_v7  ;;  %v638_v47 = vld [vmem:[#allocation11 + $0x10] sm:$0xff]  ;;  %v2267_v49 = vpack.c.bf16 %v649_v41, %v645_v40  ;;  %v648_v50 = vld [vmem:[#allocation11 + $0x60] sm:$0xff]  ;;  %v647_v51 = vld [vmem:[#allocation11 + $0x58] sm:$0xff] }
 0x104   : > { %2224 = vmatprep.subr.bf16.mxu0 %v2223_v12  ;;  %v642_v48 = vld [vmem:[#allocation11 + $0x30] sm:$0xff]  ;;  %v651_v52 = vld [vmem:[#allocation11 + $0x78] sm:$0xff]  ;;  %v653_v53 = vld [vmem:[#allocation11 + $0x88] sm:$0xff]  ;;  %v2269_v56 = vpack.c.bf16 %v648_v50, %v644_v45 }
 0x105   : > { %2254 = vmatpush1.bf16.msra.mxu1 %v2253_v18  ;;  %v657_v54 = vld [vmem:[#allocation11 + $0xa8] sm:$0xff]  ;;  %v2297_v55 = vpack.c.bf16 %v642_v48, %v638_v47  ;;  %v652_v57 = vld [vmem:[#allocation11 + $0x80] sm:$0xff]  ;;  %v2299_v58 = vpack.c.bf16 %v651_v52, %v647_v51  ;;  %v646_v59 = vld [vmem:[#allocation11 + $0x50] sm:$0xff] }
 0x106   : > { %2256 = vmatprep.subr.bf16.mxu1 %v2255_v21  ;;  %v650_v60 = vld [vmem:[#allocation11 + $0x70] sm:$0xff]  ;;  %v2271_v61 = vpack.c.bf16 %v657_v54, %v653_v53  ;;  %v656_v62 = vld [vmem:[#allocation11 + $0xa0] sm:$0xff]  ;;  %v655_v63 = vld [vmem:[#allocation11 + $0x98] sm:$0xff] }
 0x107   : > { %2226 = vmatpush1.bf16.msra.mxu0 %v2225_v19  ;;  %v659_v1 = vld [vmem:[#allocation11 + $0xb8] sm:$0xff]  ;;  %v661_v2 = vld [vmem:[#allocation11 + $0xc8] sm:$0xff]  ;;  %v2301_v4 = vpack.c.bf16 %v650_v60, %v646_v59  ;;  %v2273_v5 = vpack.c.bf16 %v656_v62, %v652_v57  ;;  %v660_v6 = vld [vmem:[#allocation11 + $0xc0] sm:$0xff] }
 0x108   : > { %2228 = vmatprep.subr.bf16.mxu0 %v2227_v24  ;;  %v665_v3 = vld [vmem:[#allocation11 + $0xe8] sm:$0xff]  ;;  %v2303_v7 = vpack.c.bf16 %v659_v1, %v655_v63  ;;  %v654_v8 = vld [vmem:[#allocation11 + $0x90] sm:$0xff]  ;;  %v664_v11 = vld [vmem:[#allocation11 + $0xe0] sm:$0xff] }
 0x109   : > { %2258 = vmatpush1.bf16.msra.mxu1 %v2257_v30  ;;  %v658_v9 = vld [vmem:[#allocation11 + $0xb0] sm:$0xff]  ;;  %v2275_v10 = vpack.c.bf16 %v665_v3, %v661_v2  ;;  %v663_v12 = vld [vmem:[#allocation11 + $0xd8] sm:$0xff]  ;;  %v669_v14 = vld [vmem:[#allocation11 + $0x108] sm:$0xff]  ;;  %v2277_v17 = vpack.c.bf16 %v664_v11, %v660_v6 }
 0x10a   : > { %2260 = vmatprep.subr.bf16.mxu1 %v2259_v33  ;;  %v667_v13 = vld [vmem:[#allocation11 + $0xf8] sm:$0xff]  ;;  %v673_v15 = vld [vmem:[#allocation11 + $0x128] sm:$0xff]  ;;  %v2305_v16 = vpack.c.bf16 %v658_v9, %v654_v8  ;;  %v668_v18 = vld [vmem:[#allocation11 + $0x100] sm:$0xff] }
 0x10b   : > { %2230 = vmatpush1.bf16.msra.mxu0 %v2229_v31  ;;  %v2307_v19 = vpack.c.bf16 %v667_v13, %v663_v12  ;;  %v662_v20 = vld [vmem:[#allocation11 + $0xd0] sm:$0xff]  ;;  %v2279_v22 = vpack.c.bf16 %v673_v15, %v669_v14  ;;  %v672_v23 = vld [vmem:[#allocation11 + $0x120] sm:$0xff]  ;;  %v671_v24 = vld [vmem:[#allocation11 + $0x118] sm:$0xff] }
 0x10c   : > { %2264 = vmatprep.subr.bf16.mxu0 %v2263_v36  ;;  %v666_v21 = vld [vmem:[#allocation11 + $0xf0] sm:$0xff]  ;;  %v675_v25 = vld [vmem:[#allocation11 + $0x138] sm:$0xff]  ;;  %v677_v26 = vld [vmem:[#allocation11 + $0x148] sm:$0xff]  ;;  %v2281_v29 = vpack.c.bf16 %v672_v23, %v668_v18 }
 0x10d   : > { %2262 = vmatpush1.bf16.msra.mxu1 %v2261_v43  ;;  %v681_v27 = vld [vmem:[#allocation11 + $0x168] sm:$0xff]  ;;  %v2309_v28 = vpack.c.bf16 %v666_v21, %v662_v20  ;;  %v676_v30 = vld [vmem:[#allocation11 + $0x140] sm:$0xff]  ;;  %v2311_v31 = vpack.c.bf16 %v675_v25, %v671_v24  ;;  %v670_v32 = vld [vmem:[#allocation11 + $0x110] sm:$0xff] }
 0x10e   : > { %555 = vmatmul.mubr.f32.vlgmr.msra.gmra.mrb[0].mxu0 %v423_v42  ;;  %2296 = vmatprep.subr.bf16.mxu1 %v2295_v46  ;;  %v674_v33 = vld [vmem:[#allocation11 + $0x130] sm:$0xff]  ;;  %v2283_v34 = vpack.c.bf16 %v681_v27, %v677_v26  ;;  %v680_v35 = vld [vmem:[#allocation11 + $0x160] sm:$0xff]  ;;  %v679_v36 = vld [vmem:[#allocation11 + $0x158] sm:$0xff] }
 0x10f   : > { %2266 = vmatpush1.bf16.msra.mxu0 %v2265_v44  ;;  %764 = vmatprep.mubr.f32.mxu0 %v2867_v0  ;;  %v683_v37 = vld [vmem:[#allocation11 + $0x178] sm:$0xff]  ;;  %v685_v38 = vld [vmem:[#allocation11 + $0x188] sm:$0xff]  ;;  %v2313_v40 = vpack.c.bf16 %v674_v33, %v670_v32  ;;  %v2285_v41 = vpack.c.bf16 %v680_v35, %v676_v30  ;;  %v678_v44 = vld [vmem:[#allocation11 + $0x150] sm:$0xff] }
 0x110   : > { %2268 = vmatprep.subr.bf16.mxu0 %v2267_v49  ;;  %626 = vmatmul.mubr.f32.vlgmr.msra.gmra.mrb[0].mxu1 %v423_v42  ;;  %v689_v39 = vld [vmem:[#allocation11 + $0x1a8] sm:$0xff]  ;;  %v684_v42 = vld [vmem:[#allocation11 + $0x180] sm:$0xff]  ;;  %v2315_v43 = vpack.c.bf16 %v683_v37, %v679_v36  ;;  %v682_v45 = vld [vmem:[#allocation11 + $0x170] sm:$0xff] }
 0x111   : > { %2298 = vmatpush1.bf16.msra.mxu1 %v2297_v55  ;;  %835 = vmatprep.mubr.f32.mxu1 %v2867_v0  ;;  %v2287_v46 = vpack.c.bf16 %v689_v39, %v685_v38  ;;  %v688_v47 = vld [vmem:[#allocation11 + $0x1a0] sm:$0xff]  ;;  %v687_v48 = vld [vmem:[#allocation11 + $0x198] sm:$0xff]  ;;  %v693_v50 = vld [vmem:[#allocation11 + $0x1c8] sm:$0xff]  ;;  %v2317_v52 = vpack.c.bf16 %v682_v45, %v678_v44 }
 0x112   : > { %2300 = vmatprep.subr.bf16.mxu1 %v2299_v58  ;;  %v691_v49 = vld [vmem:[#allocation11 + $0x1b8] sm:$0xff]  ;;  %v697_v51 = vld [vmem:[#allocation11 + $0x1e8] sm:$0xff]  ;;  %v2289_v53 = vpack.c.bf16 %v688_v47, %v684_v42  ;;  %v692_v54 = vld [vmem:[#allocation11 + $0x1c0] sm:$0xff] }
 0x113   : > { %2270 = vmatpush1.bf16.msra.mxu0 %v2269_v56  ;;  %v2319_v55 = vpack.c.bf16 %v691_v49, %v687_v48  ;;  %v686_v56 = vld [vmem:[#allocation11 + $0x190] sm:$0xff]  ;;  %v2291_v58 = vpack.c.bf16 %v697_v51, %v693_v50  ;;  %v696_v59 = vld [vmem:[#allocation11 + $0x1e0] sm:$0xff]  ;;  %v695_v60 = vld [vmem:[#allocation11 + $0x1d8] sm:$0xff] }
 0x114   : > { %2272 = vmatprep.subr.bf16.mxu0 %v2271_v61  ;;  %v690_v57 = vld [vmem:[#allocation11 + $0x1b0] sm:$0xff]  ;;  %v699_v61 = vld [vmem:[#allocation11 + $0x1f8] sm:$0xff]  ;;  %v843_v62 = vld [vmem:[#allocation12 + $0x8] sm:$0xff]  ;;  %v2293_v2 = vpack.c.bf16 %v696_v59, %v692_v54 }
 0x115   : > { %2302 = vmatpush1.bf16.msra.mxu1 %v2301_v4  ;;  %v847_v63 = vld [vmem:[#allocation12 + $0x28] sm:$0xff]  ;;  %v2321_v1 = vpack.c.bf16 %v690_v57, %v686_v56  ;;  %v2323_v3 = vpack.c.bf16 %v699_v61, %v695_v60  ;;  %v694_v4 = vld [vmem:[#allocation11 + $0x1d0] sm:$0xff]  ;;  %v846_v8 = vld [vmem:[#allocation12 + $0x20] sm:$0xff] }
 0x116   : > { %2304 = vmatprep.subr.bf16.mxu1 %v2303_v7  ;;  %v2327_v6 = vpack.c.bf16 %v847_v63, %v843_v62  ;;  %v842_v7 = vld [vmem:[#allocation12] sm:$0xff]  ;;  %v851_v9 = vld [vmem:[#allocation12 + $0x48] sm:$0xff]  ;;  %v3229_v54 = vld [vmem:[%s366_s21] sm:$0xff] }
 0x117   : > { %2274 = vmatpush1.bf16.msra.mxu0 %v2273_v5  ;;  %v698_v5 = vld [vmem:[#allocation11 + $0x1f0] sm:$0xff]  ;;  %v424_v12 = vld [vmem:[%s357_s19] sm:$0xff]  ;;  %v2329_v13 = vpack.c.bf16 %v846_v8, %v842_v7  ;;  %v849_v56 = vld [vmem:[#allocation12 + $0x38] sm:$0xff] }
 0x118   : > { %2276 = vmatprep.subr.bf16.mxu0 %v2275_v10  ;;  %v855_v10 = vld [vmem:[#allocation12 + $0x68] sm:$0xff]  ;;  %v2325_v11 = vpack.c.bf16 %v698_v5, %v694_v4  ;;  %v850_v15 = vld [vmem:[#allocation12 + $0x40] sm:$0xff]  ;;  %v844_v57 = vld [vmem:[#allocation12 + $0x10] sm:$0xff] }
 0x119   : > { %2306 = vmatpush1.bf16.msra.mxu1 %v2305_v16  ;;  %v2331_v14 = vpack.c.bf16 %v855_v10, %v851_v9  ;;  %v854_v16 = vld [vmem:[#allocation12 + $0x60] sm:$0xff]  ;;  %v859_v18 = vld [vmem:[#allocation12 + $0x88] sm:$0xff]  ;;  %v848_v59 = vld [vmem:[#allocation12 + $0x30] sm:$0xff] }
 0x11a   : > { %2308 = vmatprep.subr.bf16.mxu1 %v2307_v19  ;;  %v863_v19 = vld [vmem:[#allocation12 + $0xa8] sm:$0xff]  ;;  %v858_v21 = vld [vmem:[#allocation12 + $0x80] sm:$0xff]  ;;  %v853_v60 = vld [vmem:[#allocation12 + $0x58] sm:$0xff]  ;;  %v2361_v62 = vpack.c.bf16 %v848_v59, %v844_v57 }
 0x11b   : > { %2278 = vmatpush1.bf16.msra.mxu0 %v2277_v17  ;;  %v2333_v17 = vpack.c.bf16 %v854_v16, %v850_v15  ;;  %v2335_v20 = vpack.c.bf16 %v863_v19, %v859_v18  ;;  %v867_v24 = vld [vmem:[#allocation12 + $0xc8] sm:$0xff]  ;;  %v866_v27 = vld [vmem:[#allocation12 + $0xc0] sm:$0xff]  ;;  %v857_v61 = vld [vmem:[#allocation12 + $0x78] sm:$0xff] }
 0x11c   : > { %2280 = vmatprep.subr.bf16.mxu0 %v2279_v22  ;;  %v862_v22 = vld [vmem:[#allocation12 + $0xa0] sm:$0xff]  ;;  %v871_v25 = vld [vmem:[#allocation12 + $0xe8] sm:$0xff]  ;;  %v2363_v63 = vpack.c.bf16 %v857_v61, %v853_v60  ;;  %v865_v4 = vld [vmem:[#allocation12 + $0xb8] sm:$0xff] }
 0x11d   : > { %2310 = vmatpush1.bf16.msra.mxu1 %v2309_v28  ;;  %v2337_v23 = vpack.c.bf16 %v862_v22, %v858_v21  ;;  %v2339_v26 = vpack.c.bf16 %v871_v25, %v867_v24  ;;  %v870_v28 = vld [vmem:[#allocation12 + $0xe0] sm:$0xff]  ;;  %v875_v30 = vld [vmem:[#allocation12 + $0x108] sm:$0xff]  ;;  %v860_v7 = vld [vmem:[#allocation12 + $0x90] sm:$0xff] }
 0x11e   : > { %2312 = vmatprep.subr.bf16.mxu1 %v2311_v31  ;;  %v879_v31 = vld [vmem:[#allocation12 + $0x128] sm:$0xff]  ;;  %v874_v32 = vld [vmem:[#allocation12 + $0x100] sm:$0xff]  ;;  %v864_v8 = vld [vmem:[#allocation12 + $0xb0] sm:$0xff] }
 0x11f   : > { %2282 = vmatpush1.bf16.msra.mxu0 %v2281_v29  ;;  %v2341_v29 = vpack.c.bf16 %v870_v28, %v866_v27  ;;  %v2343_v33 = vpack.c.bf16 %v879_v31, %v875_v30  ;;  %v883_v35 = vld [vmem:[#allocation12 + $0x148] sm:$0xff]  ;;  %v882_v39 = vld [vmem:[#allocation12 + $0x140] sm:$0xff]  ;;  %v869_v9 = vld [vmem:[#allocation12 + $0xd8] sm:$0xff] }
 0x120   : > { %2284 = vmatprep.subr.bf16.mxu0 %v2283_v34  ;;  %v878_v34 = vld [vmem:[#allocation12 + $0x120] sm:$0xff]  ;;  %v887_v36 = vld [vmem:[#allocation12 + $0x168] sm:$0xff]  ;;  %v873_v10 = vld [vmem:[#allocation12 + $0xf8] sm:$0xff] }
 0x121   : > { %2314 = vmatpush1.bf16.msra.mxu1 %v2313_v40  ;;  %v2345_v37 = vpack.c.bf16 %v878_v34, %v874_v32  ;;  %v2347_v38 = vpack.c.bf16 %v887_v36, %v883_v35  ;;  %v886_v40 = vld [vmem:[#allocation12 + $0x160] sm:$0xff]  ;;  %v895_v42 = vld [vmem:[#allocation12 + $0x1a8] sm:$0xff]  ;;  %v877_v15 = vld [vmem:[#allocation12 + $0x118] sm:$0xff] }
 0x122   : > { %2316 = vmatprep.subr.bf16.mxu1 %v2315_v43  ;;  %v2349_v43 = vpack.c.bf16 %v886_v40, %v882_v39  ;;  %v890_v45 = vld [vmem:[#allocation12 + $0x180] sm:$0xff]  ;;  %v899_v47 = vld [vmem:[#allocation12 + $0x1c8] sm:$0xff]  ;;  %v881_v16 = vld [vmem:[#allocation12 + $0x138] sm:$0xff] }
 0x123   : > { %2286 = vmatpush1.bf16.msra.mxu0 %v2285_v41  ;;  %v891_v41 = vld [vmem:[#allocation12 + $0x188] sm:$0xff]  ;;  %v898_v51 = vld [vmem:[#allocation12 + $0x1c0] sm:$0xff]  ;;  %v2375_v18 = vpack.c.bf16 %v881_v16, %v877_v15  ;;  %v876_v19 = vld [vmem:[#allocation12 + $0x110] sm:$0xff] }
 0x124   : > { %2288 = vmatprep.subr.bf16.mxu0 %v2287_v46  ;;  %v2351_v44 = vpack.c.bf16 %v895_v42, %v891_v41  ;;  %v894_v46 = vld [vmem:[#allocation12 + $0x1a0] sm:$0xff]  ;;  %v903_v48 = vld [vmem:[#allocation12 + $0x1e8] sm:$0xff]  ;;  %v885_v21 = vld [vmem:[#allocation12 + $0x158] sm:$0xff] }
 0x125   : > { %2318 = vmatpush1.bf16.msra.mxu1 %v2317_v52  ;;  %v2353_v49 = vpack.c.bf16 %v894_v46, %v890_v45  ;;  %v2355_v50 = vpack.c.bf16 %v903_v48, %v899_v47  ;;  %v902_v52 = vld [vmem:[#allocation12 + $0x1e0] sm:$0xff]  ;;  %v889_v22 = vld [vmem:[#allocation12 + $0x178] sm:$0xff]  ;;  %v884_v25 = vld [vmem:[#allocation12 + $0x150] sm:$0xff] }
 0x126   : > { %2320 = vmatprep.subr.bf16.mxu1 %v2319_v55  ;;  %v845_v55 = vld [vmem:[#allocation12 + $0x18] sm:$0xff]  ;;  %v2379_v24 = vpack.c.bf16 %v889_v22, %v885_v21  ;;  %v892_v31 = vld [vmem:[#allocation12 + $0x190] sm:$0xff] }
 0x127   : > { %2290 = vmatpush1.bf16.msra.mxu0 %v2289_v53  ;;  %v2357_v53 = vpack.c.bf16 %v902_v52, %v898_v51  ;;  %v893_v27 = vld [vmem:[#allocation12 + $0x198] sm:$0xff]  ;;  %v896_v32 = vld [vmem:[#allocation12 + $0x1b0] sm:$0xff] }
 0x128   : > { %2292 = vmatprep.subr.bf16.mxu0 %v2291_v58  ;;  %v2359_v58 = vpack.c.bf16 %v849_v56, %v845_v55  ;;  %v897_v28 = vld [vmem:[#allocation12 + $0x1b8] sm:$0xff]  ;;  %v2385_v35 = vpack.c.bf16 %v896_v32, %v892_v31 }
 0x129   : > { %2322 = vmatpush1.bf16.msra.mxu1 %v2321_v1  ;;  %v852_v1 = vld [vmem:[#allocation12 + $0x50] sm:$0xff]  ;;  %v2383_v30 = vpack.c.bf16 %v897_v28, %v893_v27  ;;  %v905_v34 = vld [vmem:[#allocation12 + $0x1f8] sm:$0xff]  ;;  %v1673_v27 = vld [vmem:[#allocation14] sm:$0xff] }
 0x12a   : > { %2324 = vmatprep.subr.bf16.mxu1 %v2323_v3  ;;  %v861_v3 = vld [vmem:[#allocation12 + $0x98] sm:$0xff] }
 0x12b   : > { %2294 = vmatpush1.bf16.msra.mxu0 %v2293_v2  ;;  %v856_v2 = vld [vmem:[#allocation12 + $0x70] sm:$0xff]  ;;  %v1692_v31 = vld [vmem:[#allocation14 + $0x98] sm:$0xff] }
 0x12c   : > { %2328 = vmatprep.subr.bf16.mxu0 %v2327_v6  ;;  %v2365_v5 = vpack.c.bf16 %v856_v2, %v852_v1  ;;  %v2367_v6 = vpack.c.bf16 %v865_v4, %v861_v3 }
 0x12d   : > { %2326 = vmatpush1.bf16.msra.mxu1 %v2325_v11  ;;  %v2369_v11 = vpack.c.bf16 %v864_v8, %v860_v7 }
 0x12e   : > { %765 = vmatmul.mubr.f32.vlgmr.msra.gmra.mrb[2].mxu0 %v424_v12  ;;  %2360 = vmatprep.subr.bf16.mxu1 %v2359_v58 }
 0x12f   : > { %2330 = vmatpush1.bf16.msra.mxu0 %v2329_v13  ;;  %970 = vmatprep.mubr.f32.mxu0 %v2867_v0  ;;  %v868_v13 = vld [vmem:[#allocation12 + $0xd0] sm:$0xff] }
 0x130   : > { %2332 = vmatprep.subr.bf16.mxu0 %v2331_v14  ;;  %836 = vmatmul.mubr.f32.vlgmr.msra.gmra.mrb[2].mxu1 %v424_v12  ;;  %v2371_v12 = vpack.c.bf16 %v873_v10, %v869_v9  ;;  %v872_v14 = vld [vmem:[#allocation12 + $0xf0] sm:$0xff] }
 0x131   : > { %1041 = vmatprep.mubr.f32.mxu1 %v2867_v0  ;;  %2362 = vmatpush1.bf16.msra.mxu1 %v2361_v62 }
 0x132   : > { %2364 = vmatprep.subr.bf16.mxu1 %v2363_v63 }
 0x133   : > { %2334 = vmatpush1.bf16.msra.mxu0 %v2333_v17  ;;  %v2373_v17 = vpack.c.bf16 %v872_v14, %v868_v13 }
 0x134   : > { %2336 = vmatprep.subr.bf16.mxu0 %v2335_v20  ;;  %v880_v20 = vld [vmem:[#allocation12 + $0x130] sm:$0xff] }
 0x135   : > { %2366 = vmatpush1.bf16.msra.mxu1 %v2365_v5 }
 0x136   : > { %2368 = vmatprep.subr.bf16.mxu1 %v2367_v6 }
 0x137   : > { %2338 = vmatpush1.bf16.msra.mxu0 %v2337_v23  ;;  %v2377_v23 = vpack.c.bf16 %v880_v20, %v876_v19 }
 0x138   : > { %2340 = vmatprep.subr.bf16.mxu0 %v2339_v26  ;;  %v888_v26 = vld [vmem:[#allocation12 + $0x170] sm:$0xff] }
 0x139   : > { %2370 = vmatpush1.bf16.msra.mxu1 %v2369_v11 }
 0x13a   : > { %2372 = vmatprep.subr.bf16.mxu1 %v2371_v12 }
 0x13b   : > { %2342 = vmatpush1.bf16.msra.mxu0 %v2341_v29  ;;  %v2381_v29 = vpack.c.bf16 %v888_v26, %v884_v25  ;;  %v1689_v25 = vld [vmem:[#allocation14 + $0x80] sm:$0xff]  ;;  %v1690_v26 = vld [vmem:[#allocation14 + $0x88] sm:$0xff] }
 0x13c   : > { %2344 = vmatprep.subr.bf16.mxu0 %v2343_v33  ;;  %v901_v33 = vld [vmem:[#allocation12 + $0x1d8] sm:$0xff]  ;;  %v2391_v28 = vpack.c.bf16 %v1690_v26, %v1689_v25  ;;  %v1730_v25 = vld [vmem:[#allocation14 + $0x1c8] sm:$0xff]  ;;  %v1685_v26 = vld [vmem:[#allocation14 + $0x60] sm:$0xff] }
 0x13d   : > { %2374 = vmatpush1.bf16.msra.mxu1 %v2373_v17  ;;  %v2387_v36 = vpack.c.bf16 %v905_v34, %v901_v33  ;;  %v1675_v34 = vld [vmem:[#allocation14 + $0x10] sm:$0xff] }
 0x13e   : > { %2376 = vmatprep.subr.bf16.mxu1 %v2375_v18 }
 0x13f   : > { %2346 = vmatpush1.bf16.msra.mxu0 %v2345_v37  ;;  %v900_v37 = vld [vmem:[#allocation12 + $0x1d0] sm:$0xff] }
 0x140   : > { %2348 = vmatprep.subr.bf16.mxu0 %v2347_v38  ;;  %v904_v38 = vld [vmem:[#allocation12 + $0x1f0] sm:$0xff] }
 0x141   : > { %2378 = vmatpush1.bf16.msra.mxu1 %v2377_v23  ;;  %v2389_v39 = vpack.c.bf16 %v904_v38, %v900_v37  ;;  %v1721_v37 = vld [vmem:[#allocation14 + $0x180] sm:$0xff]  ;;  %v1722_v38 = vld [vmem:[#allocation14 + $0x188] sm:$0xff] }
 0x142   : > { %2380 = vmatprep.subr.bf16.mxu1 %v2379_v24 }
 0x143   : > { %2350 = vmatpush1.bf16.msra.mxu0 %v2349_v43 }
 0x144   : > { %2352 = vmatprep.subr.bf16.mxu0 %v2351_v44 }
 0x145   : > { %2382 = vmatpush1.bf16.msra.mxu1 %v2381_v29  ;;  %v1674_v29 = vld [vmem:[#allocation14 + $0x8] sm:$0xff] }
 0x146   : > { %2384 = vmatprep.subr.bf16.mxu1 %v2383_v30  ;;  %v1691_v30 = vld [vmem:[#allocation14 + $0x90] sm:$0xff]  ;;  %v2393_v32 = vpack.c.bf16 %v1674_v29, %v1673_v27  ;;  %v1686_v27 = vld [vmem:[#allocation14 + $0x68] sm:$0xff] }
 0x147   : > { %2354 = vmatpush1.bf16.msra.mxu0 %v2353_v49  ;;  %v2395_v33 = vpack.c.bf16 %v1692_v31, %v1691_v30  ;;  %v2417_v29 = vpack.c.bf16 %v1686_v27, %v1685_v26  ;;  %v1713_v30 = vld [vmem:[#allocation14 + $0x140] sm:$0xff]  ;;  %v1714_v31 = vld [vmem:[#allocation14 + $0x148] sm:$0xff] }
 0x148   : > { %2356 = vmatprep.subr.bf16.mxu0 %v2355_v50 }
 0x149   : > { %2386 = vmatpush1.bf16.msra.mxu1 %v2385_v35  ;;  %v1693_v35 = vld [vmem:[#allocation14 + $0xa0] sm:$0xff] }
 0x14a   : > { %2388 = vmatprep.subr.bf16.mxu1 %v2387_v36  ;;  %v1694_v36 = vld [vmem:[#allocation14 + $0xa8] sm:$0xff] }
 0x14b   : > { %2358 = vmatpush1.bf16.msra.mxu0 %v2357_v53 }
 0x14c   : > { %2159 = vmatprep.subr.mxu0 %v2867_v0 }
 0x14d   : > { %2390 = vmatpush1.bf16.msra.mxu1 %v2389_v39 }
 0x14e   : > { %971 = vmatmul.mubr.f32.vlgmr.msra.gmra.mrb[4].mxu0 %v3229_v54  ;;  %2164 = vmatprep.subr.mxu1 %v2867_v0 }
 0x14f   : > { %2161 = vmatprep.mubr.msk.f32.mxu0 %vm2868_vm0, %v2867_v0 }
 0x150   : > { %1042 = vmatmul.mubr.f32.vlgmr.msra.gmra.mrb[4].mxu1 %v3229_v54 }
 0x151   : > { %2166 = vmatprep.mubr.msk.f32.mxu1 %vm2868_vm0, %v2867_v0 }
 0x1e1   : > { %v556_v40 = vpop.f32.mrb[0].mxu0 }
 0x1e2   : > { %v558_v41 = vpop.f32.mrb[1].mxu0  ;;  %v632_v46 = vmul.f32 0.35355338, %v556_v40  ;;  %v2423_v40 = vpack.c.bf16 %v1722_v38, %v1721_v37  ;;  %v1687_v37 = vld [vmem:[#allocation14 + $0x70] sm:$0xff]  ;;  %v1688_v38 = vld [vmem:[#allocation14 + $0x78] sm:$0xff] }
 0x1e3   : > { %v627_v42 = vpop.f32.mrb[0].mxu1  ;;  %v633_v49 = vmul.f32 0.35355338, %v558_v41  ;;  %v1677_v41 = vld [vmem:[#allocation14 + $0x20] sm:$0xff] }
 0x1e4   : > { %v629_v43 = vpop.f32.mrb[1].mxu1  ;;  %v634_v50 = vmul.f32 0.35355338, %v627_v42  ;;  %v1705_v42 = vld [vmem:[#allocation14 + $0x100] sm:$0xff] }
 0x1e5   : > { %v635_v51 = vmul.f32 0.35355338, %v629_v43  ;;  %v2399_v43 = vpack.c.bf16 %v1694_v36, %v1693_v35  ;;  %v1732_v36 = vld [vmem:[#allocation14 + $0x1d8] sm:$0xff] }
 0x201   : > { %v766_v44 = vpop.f32.mrb[2].mxu0 }
 0x202   : > { %v768_v45 = vpop.f32.mrb[3].mxu0  ;;  %2160 = vmatpush3.xpose.msra.mxu0 %v766_v44  ;;  %v1678_v44 = vld [vmem:[#allocation14 + $0x28] sm:$0xff] }
 0x203   : > { %2169 = vmatprep.subr.mxu0 %v2867_v0  ;;  %v837_v47 = vpop.f32.mrb[2].mxu1 }
 0x204   : > { %v839_v48 = vpop.f32.mrb[3].mxu1 }
 0x205   : > { %2162 = vmatmul.mubr.f32.vlgmr.msra.gmra.mrb[6].mxu0 %v632_v46  ;;  %v1695_v46 = vld [vmem:[#allocation14 + $0xb0] sm:$0xff] }
 0x206   : > { %2170 = vmatpush3.xpose.msra.mxu0 %v768_v45  ;;  %2171 = vmatprep.mubr.msk.f32.mxu0 %vm2868_vm0, %v2867_v0  ;;  %v1706_v45 = vld [vmem:[#allocation14 + $0x108] sm:$0xff] }
 0x207   : > { %2179 = vmatprep.subr.mxu0 %v2867_v0 }
 0x209   : > { %2172 = vmatmul.mubr.f32.vlgmr.msra.gmra.mrb[8].mxu0 %v633_v49  ;;  %v1723_v49 = vld [vmem:[#allocation14 + $0x190] sm:$0xff] }
 0x20a   : > { %2180 = vmatpush3.xpose.msra.mxu0 %v837_v47  ;;  %2181 = vmatprep.mubr.msk.f32.mxu0 %vm2868_vm0, %v2867_v0  ;;  %v2425_v47 = vpack.c.bf16 %v1706_v45, %v1705_v42  ;;  %v1716_v42 = vld [vmem:[#allocation14 + $0x158] sm:$0xff]  ;;  %v1734_v45 = vld [vmem:[#allocation14 + $0x1e8] sm:$0xff] }
 0x20b   : > { %2189 = vmatprep.subr.mxu0 %v2867_v0 }
 0x20d   : > { %2182 = vmatmul.mubr.f32.vlgmr.msra.gmra.mrb[10].mxu0 %v634_v50  ;;  %v1724_v50 = vld [vmem:[#allocation14 + $0x198] sm:$0xff] }
 0x20e   : > { %2190 = vmatpush3.xpose.msra.mxu0 %v839_v48  ;;  %2191 = vmatprep.mubr.msk.f32.mxu0 %vm2868_vm0, %v2867_v0  ;;  %v1696_v48 = vld [vmem:[#allocation14 + $0xb8] sm:$0xff] }
 0x20f   : > { %2392 = vmatprep.subr.bf16.mxu0 %v2391_v28 }
 0x211   : > { %2192 = vmatmul.mubr.f32.vlgmr.msra.gmra.mrb[12].mxu0 %v635_v51  ;;  %v2427_v51 = vpack.c.bf16 %v1724_v50, %v1723_v49  ;;  %v1735_v50 = vld [vmem:[#allocation14 + $0x1f0] sm:$0xff] }
 0x212   : > { %2394 = vmatpush3.bf16.msra.mxu0 %v2393_v32  ;;  %v2441_v32 = vpack.c.bf16 %v1714_v31, %v1713_v30 }
 0x213   : > { %2396 = vmatprep.subr.bf16.mxu0 %v2395_v33  ;;  %v1703_v33 = vld [vmem:[#allocation14 + $0xf0] sm:$0xff] }
 0x221   : > { %v972_v52 = vpop.f32.mrb[4].mxu0 }
 0x222   : > { %v974_v53 = vpop.f32.mrb[5].mxu0  ;;  %2165 = vmatpush3.msra.mxu1 %v972_v52  ;;  %v1707_v52 = vld [vmem:[#allocation14 + $0x110] sm:$0xff] }
 0x223   : > { %2174 = vmatprep.subr.mxu1 %v2867_v0  ;;  %v1043_v3 = vpop.f32.mrb[4].mxu1 }
 0x224   : > { %v1045_v4 = vpop.f32.mrb[5].mxu1 }
 0x2d8   : > { %v1114_v54 = vpop.f32.mrb[6].mxu0 }
 0x2d9   : > { %v2163_v55 = vpop.f32.mrb[7].mxu0  ;;  %v1119_v56 = vsel %vm1118_vm1, %v1114_v54, -inf }
 0x2da   : > { %1120 = vmax.xlane.f32.xlu0 %v1119_v56  ;;  %v1679_v55 = vld [vmem:[#allocation14 + $0x30] sm:$0xff] }
 0x2dc   : > { %v1270_v57 = vpop.f32.mrb[8].mxu0 }
 0x2dd   : > { %v2173_v58 = vpop.f32.mrb[9].mxu0  ;;  %v1274_v59 = vsel %vm1118_vm1, %v1270_v57, -inf }
 0x2de   : > { %1275 = vmax.xlane.f32.xlu0 %v1274_v59  ;;  %v2403_v58 = vpack.c.bf16 %v1696_v48, %v1695_v46  ;;  %v1680_v59 = vld [vmem:[#allocation14 + $0x38] sm:$0xff]  ;;  %v1718_v48 = vld [vmem:[#allocation14 + $0x168] sm:$0xff] }
 0x2e0   : > { %v1425_v60 = vpop.f32.mrb[10].mxu0 }
 0x2e1   : > { %v2183_v61 = vpop.f32.mrb[11].mxu0  ;;  %v1429_v62 = vsel %vm1118_vm1, %v1425_v60, -inf }
 0x2e2   : > { %1430 = vmax.xlane.f32.xlu1 %v1429_v62  ;;  %v1726_v61 = vld [vmem:[#allocation14 + $0x1a8] sm:$0xff] }
 0x2e3   : > { %v1698_v62 = vld [vmem:[#allocation14 + $0xc8] sm:$0xff] }
 0x2e4   : > { %v1580_v63 = vpop.f32.mrb[12].mxu0 }
 0x2e5   : > { %v2193_v1 = vpop.f32.mrb[13].mxu0  ;;  %v1584_v2 = vsel %vm1118_vm1, %v1580_v63, -inf }
 0x2e6   : > { %1585 = vmax.xlane.f32.xlu1 %v1584_v2  ;;  %v1709_v1 = vld [vmem:[#allocation14 + $0x120] sm:$0xff]  ;;  %v1710_v2 = vld [vmem:[#allocation14 + $0x128] sm:$0xff] }
 0x367   : > { %v1121_v5 = vpop.xlane.xlu0 %1120 }
 0x368   : > { %v1122_v6 = vsub.f32 %v1114_v54, %v1121_v5  ;;  %v2401_v54 = vpack.c.bf16 %v1678_v44, %v1677_v41  ;;  %v2405_v5 = vpack.c.bf16 %v1680_v59, %v1679_v55  ;;  %v1715_v41 = vld [vmem:[#allocation14 + $0x150] sm:$0xff]  ;;  %v1733_v44 = vld [vmem:[#allocation14 + $0x1e0] sm:$0xff] }
 0x369   : > { %v2447_v46 = vpack.c.bf16 %v1734_v45, %v1733_v44 }
 0x36a   : > { %v1123_v7 = vmul.f32 1.442695, %v1122_v6  ;;  %v1681_v6 = vld [vmem:[#allocation14 + $0x40] sm:$0xff] }
 0x36b   : > { %v1276_v8 = vpop.xlane.xlu0 %1275 }
 0x36c   : > { %2558 = vpow2.f32 %v1123_v7  ;;  %v1277_v9 = vsub.f32 %v1270_v57, %v1276_v8  ;;  %v1725_v57 = vld [vmem:[#allocation14 + $0x1a0] sm:$0xff]  ;;  %v2433_v7 = vpack.c.bf16 %v1710_v2, %v1709_v1 }
 0x36e   : > { %v1278_v10 = vmul.f32 1.442695, %v1277_v9  ;;  %v1682_v9 = vld [vmem:[#allocation14 + $0x48] sm:$0xff] }
 0x36f   : > { %v1431_v11 = vpop.xlane.xlu1 %1430 }
 0x370   : > { %2560 = vpow2.f32 %v1278_v10  ;;  %v1432_v12 = vsub.f32 %v1425_v60, %v1431_v11  ;;  %v1697_v60 = vld [vmem:[#allocation14 + $0xc0] sm:$0xff]  ;;  %v1711_v11 = vld [vmem:[#allocation14 + $0x130] sm:$0xff] }
 0x371   : > { %v2407_v8 = vpack.c.bf16 %v1698_v62, %v1697_v60 }
 0x372   : > { %v1433_v13 = vmul.f32 1.442695, %v1432_v12  ;;  %v1712_v12 = vld [vmem:[#allocation14 + $0x138] sm:$0xff] }
 0x373   : > { %v1586_v14 = vpop.xlane.xlu1 %1585 }
 0x374   : > { %2562 = vpow2.f32 %v1433_v13  ;;  %v1587_v15 = vsub.f32 %v1580_v63, %v1586_v14  ;;  %v2431_v63 = vpack.c.bf16 %v1726_v61, %v1725_v57  ;;  %v1699_v13 = vld [vmem:[#allocation14 + $0xd0] sm:$0xff]  ;;  %v1700_v14 = vld [vmem:[#allocation14 + $0xd8] sm:$0xff] }
 0x376   : > { %v2559_v16 = vpop.eup %2558  ;;  %v1588_v17 = vmul.f32 1.442695, %v1587_v15  ;;  %v2409_v15 = vpack.c.bf16 %v1682_v9, %v1681_v6 }
 0x377   : > { %2167 = vmatmul.mubr.msk.f32.vlgmr.msra.gmra.mrb[6].mxu1 %vm1118_vm1, %v2559_v16  ;;  %v1125_v21 = vsel %vm1118_vm1, %v2559_v16, 0.0  ;;  %v2437_v16 = vpack.c.bf16 %v1712_v12, %v1711_v11 }
 0x378   : > { %2564 = vpow2.f32 %v1588_v17  ;;  %2175 = vmatpush3.msra.mxu1 %v974_v53  ;;  %2176 = vmatprep.mubr.msk.f32.mxu1 %vm2868_vm0, %v2867_v0  ;;  %v1708_v53 = vld [vmem:[#allocation14 + $0x118] sm:$0xff]  ;;  %v2411_v17 = vpack.c.bf16 %v1700_v14, %v1699_v13 }
 0x379   : > { %2184 = vmatprep.subr.mxu1 %v2867_v0  ;;  %v2429_v56 = vpack.c.bf16 %v1708_v53, %v1707_v52  ;;  %v1719_v53 = vld [vmem:[#allocation14 + $0x170] sm:$0xff] }
 0x37a   : > { %v2561_v18 = vpop.eup %2560 }
 0x37b   : > { %2177 = vmatmul.mubr.msk.f32.vlgmr.msra.gmra.mrb[8].mxu1 %vm1118_vm1, %v2561_v18  ;;  %v1280_v19 = vsel %vm1118_vm1, %v2561_v18, 0.0  ;;  %v1683_v18 = vld [vmem:[#allocation14 + $0x50] sm:$0xff] }
 0x37c   : > { %2185 = vmatpush3.msra.mxu1 %v1043_v3  ;;  %1281 = vadd.xlane.f32.xlu0 %v1280_v19  ;;  %v1727_v3 = vld [vmem:[#allocation14 + $0x1b0] sm:$0xff]  ;;  %v1684_v19 = vld [vmem:[#allocation14 + $0x58] sm:$0xff] }
 0x37d   : > { %2186 = vmatprep.mubr.msk.f32.mxu1 %vm2868_vm0, %v2867_v0  ;;  %2194 = vmatprep.subr.mxu1 %v2867_v0 }
 0x37e   : > { %v2563_v20 = vpop.eup %2562 }
 0x37f   : > { %2187 = vmatmul.mubr.msk.f32.vlgmr.msra.gmra.mrb[10].mxu1 %vm1118_vm1, %v2563_v20  ;;  %v1435_v24 = vsel %vm1118_vm1, %v2563_v20, 0.0  ;;  %v2413_v20 = vpack.c.bf16 %v1684_v19, %v1683_v18 }
 0x380   : > { %2195 = vmatpush3.msra.mxu1 %v1045_v4  ;;  %1126 = vadd.xlane.f32.xlu0 %v1125_v21  ;;  %v1728_v4 = vld [vmem:[#allocation14 + $0x1b8] sm:$0xff]  ;;  %v1701_v21 = vld [vmem:[#allocation14 + $0xe0] sm:$0xff] }
 0x381   : > { %2196 = vmatprep.mubr.msk.f32.mxu1 %vm2868_vm0, %v2867_v0  ;;  %v1676_v0 = vld [vmem:[#allocation14 + $0x18] sm:$0xff]  ;;  %2424 = vmatprep.subr.bf16.mxu1 %v2423_v40  ;;  %v2435_v10 = vpack.c.bf16 %v1728_v4, %v1727_v3  ;;  %v2421_v40 = vpack.c.bf16 %v1688_v38, %v1687_v37 }
 0x382   : > { %v2565_v22 = vpop.eup %2564  ;;  %v2397_v39 = vpack.c.bf16 %v1676_v0, %v1675_v34  ;;  %v1704_v34 = vld [vmem:[#allocation14 + $0xf8] sm:$0xff]  ;;  %v1731_v0 = vld [vmem:[#allocation14 + $0x1d0] sm:$0xff] }
 0x383   : > { %2197 = vmatmul.mubr.msk.f32.vlgmr.msra.gmra.mrb[12].mxu1 %vm1118_vm1, %v2565_v22  ;;  %v1590_v23 = vsel %vm1118_vm1, %v2565_v22, 0.0  ;;  %v1702_v22 = vld [vmem:[#allocation14 + $0xe8] sm:$0xff]  ;;  %v2419_v35 = vpack.c.bf16 %v1704_v34, %v1703_v33 }
 0x384   : > { %1591 = vadd.xlane.f32.xlu1 %v1590_v23  ;;  %2398 = vmatpush3.bf16.msra.mxu0 %v2397_v39  ;;  %v1729_v23 = vld [vmem:[#allocation14 + $0x1c0] sm:$0xff]  ;;  %v2443_v39 = vpack.c.bf16 %v1732_v36, %v1731_v0 }
 0x385   : > { %2426 = vmatpush3.bf16.msra.mxu1 %v2425_v47  ;;  %2400 = vmatprep.subr.bf16.mxu0 %v2399_v43  ;;  %v2439_v28 = vpack.c.bf16 %v1730_v25, %v1729_v23  ;;  %v2445_v43 = vpack.c.bf16 %v1716_v42, %v1715_v41  ;;  %v1717_v47 = vld [vmem:[#allocation14 + $0x160] sm:$0xff] }
 0x386   : > { %2428 = vmatprep.subr.bf16.mxu1 %v2427_v51  ;;  %v2449_v49 = vpack.c.bf16 %v1718_v48, %v1717_v47  ;;  %v1736_v51 = vld [vmem:[#allocation14 + $0x1f8] sm:$0xff] }
 0x387   : > { %v2451_v52 = vpack.c.bf16 %v1736_v51, %v1735_v50 }
 0x388   : > { %1436 = vadd.xlane.f32.xlu1 %v1435_v24  ;;  %2402 = vmatpush3.bf16.msra.mxu0 %v2401_v54  ;;  %v2415_v24 = vpack.c.bf16 %v1702_v22, %v1701_v21  ;;  %v1720_v54 = vld [vmem:[#allocation14 + $0x178] sm:$0xff] }
 0x389   : > { %2430 = vmatpush3.bf16.msra.mxu1 %v2429_v56  ;;  %2404 = vmatprep.subr.bf16.mxu0 %v2403_v58  ;;  %v2453_v55 = vpack.c.bf16 %v1720_v54, %v1719_v53 }
 0x38a   : > { %2432 = vmatprep.subr.bf16.mxu1 %v2431_v63 }
 0x38c   : > { %2406 = vmatpush3.bf16.msra.mxu0 %v2405_v5 }
 0x38d   : > { %2434 = vmatpush3.bf16.msra.mxu1 %v2433_v7  ;;  %2408 = vmatprep.subr.bf16.mxu0 %v2407_v8 }
 0x38e   : > { %2436 = vmatprep.subr.bf16.mxu1 %v2435_v10 }
 0x390   : > { %2410 = vmatpush3.bf16.msra.mxu0 %v2409_v15 }
 0x391   : > { %2438 = vmatpush3.bf16.msra.mxu1 %v2437_v16  ;;  %2412 = vmatprep.subr.bf16.mxu0 %v2411_v17 }
 0x392   : > { %2440 = vmatprep.subr.bf16.mxu1 %v2439_v28 }
 0x394   : > { %2414 = vmatpush3.bf16.msra.mxu0 %v2413_v20 }
 0x395   : > { %2416 = vmatprep.subr.bf16.mxu0 %v2415_v24  ;;  %2442 = vmatpush3.bf16.msra.mxu1 %v2441_v32 }
 0x396   : > { %2444 = vmatprep.subr.bf16.mxu1 %v2443_v39 }
 0x398   : > { %2418 = vmatpush3.bf16.msra.mxu0 %v2417_v29 }
 0x399   : > { %2420 = vmatprep.subr.bf16.mxu0 %v2419_v35  ;;  %2446 = vmatpush3.bf16.msra.mxu1 %v2445_v43 }
 0x39a   : > { %2448 = vmatprep.subr.bf16.mxu1 %v2447_v46 }
 0x39c   : > { %2422 = vmatpush3.bf16.msra.mxu0 %v2421_v40 }
 0x39d   : > { %2450 = vmatpush3.bf16.msra.mxu1 %v2449_v49 }
 0x39e   : > { %2452 = vmatprep.subr.bf16.mxu1 %v2451_v52 }
 0x3a1   : > { %2454 = vmatpush3.bf16.msra.mxu1 %v2453_v55 }
 0x409   : > { %v1282_v56 = vpop.xlane.xlu0 %1281 }
 0x40a   : > { %2566 = vrcp.f32 %v1282_v56 }
 0x40d   : > { %v1127_v57 = vpop.xlane.xlu0 %1126 }
 0x40e   : > { %2568 = vrcp.f32 %v1127_v57 }
 0x411   : > { %v1592_v58 = vpop.xlane.xlu1 %1591 }
 0x412   : > { %2570 = vrcp.f32 %v1592_v58 }
 0x414   : > { %v2567_v62 = vpop.eup %2566 }
 0x415   : > { %v1437_v59 = vpop.xlane.xlu1 %1436 }
 0x416   : > { %2572 = vrcp.f32 %v1437_v59 }
 0x418   : > { %v2569_v1 = vpop.eup %2568 }
 0x41c   : > { %v2571_v7 = vpop.eup %2570 }
 0x420   : > { %v2573_v9 = vpop.eup %2572 }
 0x44a   : > { %v1197_v60 = vpop.f32.mrb[6].mxu1 }
 0x44b   : > { %v2168_v61 = vpop.f32.mrb[7].mxu1  ;;  %v1202_v4 = vmul.f32 %v2569_v1, %v1197_v60 }
 0x44e   : > { %v1352_v63 = vpop.f32.mrb[8].mxu1 }
 0x44f   : > { %v1357_v2 = vmul.f32 %v2567_v62, %v1352_v63  ;;  %v2178_v3 = vpop.f32.mrb[9].mxu1 }
 0x451   : > { %1801 = vmatprep.mubr.f32.mxu0 %v1357_v2 }
 0x452   : > { %v1507_v5 = vpop.f32.mrb[10].mxu1  ;;  %1802 = vmatmul.mubr.f32.vlgmr.msra.gmra.mrb[14].mxu0 %v1202_v4 }
 0x453   : > { %v2188_v6 = vpop.f32.mrb[11].mxu1  ;;  %v1512_v12 = vmul.f32 %v2573_v9, %v1507_v5 }
 0x456   : > { %v1662_v8 = vpop.f32.mrb[12].mxu1 }
 0x457   : > { %v1667_v10 = vmul.f32 %v2571_v7, %v1662_v8  ;;  %v2198_v11 = vpop.f32.mrb[13].mxu1 }
 0x459   : > { %1871 = vmatprep.mubr.f32.mxu1 %v1667_v10 }
 0x45a   : > { %1872 = vmatmul.mubr.f32.vlgmr.msra.gmra.mrb[14].mxu1 %v1512_v12 }
 0x525   : > { %v2121_v13 = vpop.f32.mrb[14].mxu0 }
 0x526   : > { %v2122_v14 = vpop.f32.mrb[15].mxu0 }
 0x527   : > { %v2123_v15 = vadd.f32 %v2122_v14, %v2121_v13 }
 0x52d   : > { %v2156_v16 = vpop.f32.mrb[14].mxu1 }
 0x52e   : > { %v2157_v17 = vpop.f32.mrb[15].mxu1 }
 0x52f   : > { %v2158_v18 = vadd.f32 %v2157_v17, %v2156_v16 }
 0x531   : > { %v1874_v19 = vadd.f32 %v2158_v18, %v2123_v15 }
 0x533   : > { %1877 = vst [vmem:[%s422_s28] sm:$0xff] %v1874_v19 }
 0x534   : > { %2789 = shalt.err (!%p2786_p4)
}
 0x535   : > { %s2790_s18 = scalar_lea.hbm %s3273_s27, 128  ;;  %s2794_s7 = scalar_lea.hbm %s3380_s22, 256 }
 0x536   : > { %p2791_p10 = scmp.ne.s32.totalorder %s3273_s27, %s2790_s18  ;;  %p2795_p12 = scmp.lt.u32.totalorder %s3273_s27, %s3380_s22 }
 0x537   : > { %p2796_p0 = scmp.lt.u32.totalorder %s2794_s7, %s2790_s18  ;;  %p2798_p9 = scmp.lt.u32.totalorder %s2790_s18, %s3273_s27 }
 0x538   : > { %p2792_p3 = pnand %p2791_p10, %p3381_p13 }
 0x539   : > { %p2797_p7 = por %p2796_p0, %p2795_p12 }
 0x53a   : > { %p2793_p8 = pneg %p2792_p3 }
 0x53b   : > { %p2799_p11 = por %p2798_p9, %p2797_p7 }
 0x53d   : > { %p2800_p1 = pnand %p2799_p11, %p2793_p8 }
 0x53f   : > { %2803 = shalt.err (!%p2800_p1)
}
 0x540   : > { %2477 = dma.vmem_to_hbm [thread:$0]  (%p3381_p13), %s3275_s9, 128, %s3273_s27, %s1879_s3  }
 0x541 PF: > { %s3382_s1 = sld [smem:[#allocation21_spill]]  ;;  %s3383_s17 = sld [smem:[#allocation25_spill]] }
 0x542   : > { %s3384_s5 = sld [smem:[#allocation22_spill]] }
 0x547   : > { %s1904_s8 = sand.u32 1, %s3382_s1   ;;  %p3385_p6 = scmp.ne.s32.totalorder %s3383_s17, 0 }
 0x548   : > { %p3386_p5 = scmp.ge.s32.totalorder %s3384_s5, 2  ;;  %s1905_s19 = scalar_lea.sflag [#allocation5], %s1904_s8 }
 0x54a   : > { %p2503_p2 = pnand %p3386_p5, %p3385_p6 }
 0x54c   : > { %2837 = dma.done.wait (!%p2503_p2), %s1905_s19, 128  }
 0x54d   : > { %2839 = vsyncadd (!%p2503_p2), %s1905_s19, 4294967168  ;;  %s3387_s27 = sld [smem:[#allocation23_spill]]  ;;  %s3388_s21 = sld [smem:[#allocation24_spill]] }
 0x54e   : > { %s3389_s24 = smov %s2846_s25  ;;  %s3390_s25 = smov %s2850_s26 }
 0x553   : > { %p25_p4 = scmp.ge.s32.totalorder %s3387_s27, 4   ;;  %s3391_s26 = smov %s3388_s21 }
 0x555   :  { %27 = sbr.rel (!%p25_p4) target bundleno = 14 (0xe), region = 133 }
 0x55c   :  { %1910 = vsyncpa [#allocation4], 1 }
 0x55d   :  { %1912 = vsyncpa [#allocation4 + $0x1], 1 }
 0x55e   :  { %1913 = vsyncpa [#allocation7], 1 }
 0x55f   :  { %1915 = vsyncpa [#allocation7 + $0x1], 1 }
 0x560   :  { %1916 = vsyncpa [#allocation10], 1 }
 0x561   :  { %1917 = vsyncpa [#allocation13], 1 }
 0x562   :  { %1918 = vsyncpa [#allocation5], 1 }
 0x563   :  { %1920 = vsyncpa [#allocation5 + $0x1], 1 }

</bundles_post_ra>
